<compile_context>
chip_gen: v7x
topology: tpu7x:2x2x1
jax: 0.10.0
libtpu: 0.0.40
codegen_flags: <defaults>
</compile_context>

<pallas_src>
import functools

import jax
import jax.numpy as jnp
from jax.experimental import pallas as pl
from jax.experimental.pallas import tpu as pltpu


def _round_up(x, m):
    return ((x + m - 1) // m) * m


# ----------------------------------------------------------------------------
# Fused kernel: mask multiply + image-encoder MLP per view, accumulate over V,
# mean + finalEncodingNetwork on the last view step.
# Grid = (row_tiles, V); output block resident across the V ("arbitrary") axis.
# ----------------------------------------------------------------------------
def _fused_kernel(i_ref, m_ref, w1_ref, b1_ref, w2_ref, b2_ref,
                  wf1_ref, bf1_ref, wf2_ref, bf2_ref, wf3_ref, bf3_ref,
                  z_ref, x_scr, acc_ref, *, n_views):
    v = pl.program_id(1)

    @pl.when(v == 0)
    def _():
        acc_ref[...] = jnp.zeros_like(acc_ref)

    BT, C, HW = i_ref.shape          # (batches-per-tile, channels, H*W)
    nM = m_ref.shape[1]

    # --- fused mask multiply, entirely in VMEM (no HBM round trip) -----------
    #   x[bt*nM + m, c*HW + p] = M[bt, m, p] * I[bt, c, p]
    # Static unrolled loops; every slice is static and 2-D, so no Mosaic
    # relayout / exotic reshape is needed.  BT*C is a small tile parameter.
    for bt in range(BT):
        msk_b = m_ref[bt]            # (nM, HW)
        img_b = i_ref[bt]            # (C,  HW)
        for c in range(C):
            x_scr[bt * nM:(bt + 1) * nM, c * HW:(c + 1) * HW] = (
                msk_b * img_b[c:c + 1, :])

    # --- image encoder (flatten -> Linear -> ReLU -> Linear), wide-row matmul
    x = x_scr[...]                                                  # (TR, D)
    h = jnp.dot(x, w1_ref[...], preferred_element_type=jnp.float32) + b1_ref[...]
    h = jnp.maximum(h, 0.0)
    e = jnp.dot(h, w2_ref[...], preferred_element_type=jnp.float32) + b2_ref[...]
    acc_ref[...] += e                                               # sum over V

    # --- last view: mean over V + finalEncodingNetwork (lane-dense output) ---
    @pl.when(v == pl.num_programs(1) - 1)
    def _():
        e_mean = acc_ref[...] * (1.0 / n_views)
        h1 = jnp.maximum(
            jnp.dot(e_mean, wf1_ref[...], preferred_element_type=jnp.float32)
            + bf1_ref[...], 0.0)
        h2 = jnp.maximum(
            jnp.dot(h1, wf2_ref[...], preferred_element_type=jnp.float32)
            + bf2_ref[...], 0.0)
        z_ref[...] = (jnp.dot(h2, wf3_ref[...], preferred_element_type=jnp.float32)
                      + bf3_ref[...])


# ----------------------------------------------------------------------------
# Full forward (only contiguous reshapes + weight padding outside the kernel)
# ----------------------------------------------------------------------------
def object_encoder_2d_single_view(I, M, params, KT=None, *, batches_per_tile=None):
    """I: (B,V,C,H,W)  M: (B,V,nM,H,W)  KT: unused.  Returns (B, nM, k)."""
    del KT
    B, V, C, H, W = I.shape
    nM = M.shape[2]
    HW = H * W
    D = C * HW
    w1, b1, w2, b2, wf1, bf1, wf2, bf2, wf3, bf3 = params
    F = w2.shape[1]
    two_k = wf1.shape[1]
    k = wf3.shape[1]

    # Row tile: BT batches per grid step -> BT*nM matmul rows.
    # On real shapes pick BT so BT*nM is ~128..256; default = whole batch.
    BT = batches_per_tile if batches_per_tile is not None else B
    assert B % BT == 0, "batches_per_tile must divide B"
    TR = BT * nM

    # Contiguous flattens only (no data movement).
    I4 = I.reshape(B, V, C, HW)
    M4 = M.reshape(B, V, nM, HW)

    # Zero-pad the final-MLP weights to lane-dense (multiple-of-128) widths;
    # padded rows/cols are zero so the first k outputs are unchanged.
    P2 = _round_up(two_k, 128)
    PK = _round_up(k, 128)

    def pad2(a, r, c):
        return jnp.pad(a, ((0, r - a.shape[0]), (0, c - a.shape[1])))

    wf1p, bf1p = pad2(wf1, F, P2), pad2(bf1, 1, P2)
    wf2p, bf2p = pad2(wf2, P2, P2), pad2(bf2, 1, P2)
    wf3p, bf3p = pad2(wf3, P2, PK), pad2(bf3, 1, PK)

    def full_spec(shape):
        nd = len(shape)
        return pl.BlockSpec(shape, lambda r, v, _n=nd: (0,) * _n)

    kernel = functools.partial(_fused_kernel, n_views=V)
    z_pad = pl.pallas_call(
        kernel,
        out_shape=jax.ShapeDtypeStruct((B * nM, PK), jnp.float32),
        grid=(B // BT, V),
        in_specs=[
            # `None` squeezes the view axis out of the kernel refs.
            pl.BlockSpec((BT, None, C, HW), lambda r, v: (r, v, 0, 0)),
            pl.BlockSpec((BT, None, nM, HW), lambda r, v: (r, v, 0, 0)),
            full_spec(w1.shape), full_spec(b1.shape),
            full_spec(w2.shape), full_spec(b2.shape),
            full_spec(wf1p.shape), full_spec(bf1p.shape),
            full_spec(wf2p.shape), full_spec(bf2p.shape),
            full_spec(wf3p.shape), full_spec(bf3p.shape),
        ],
        # Output block index is constant across the V axis -> accumulator
        # residency.  Do NOT mark the V axis "parallel".
        out_specs=pl.BlockSpec((TR, PK), lambda r, v: (r, 0)),
        scratch_shapes=[
            pltpu.VMEM((TR, D), jnp.float32),   # fused masked-image tile
            pltpu.VMEM((TR, F), jnp.float32),   # per-view encoding accumulator
        ],
        compiler_params=pltpu.CompilerParams(
            dimension_semantics=("parallel", "arbitrary")),
    )(I4, M4, w1, b1, w2, b2, wf1p, bf1p, wf2p, bf2p, wf3p, bf3p)

    return z_pad[:, :k].reshape(B, nM, k)


# ----------------------------------------------------------------------------
# Deterministic parameter init + pure-JAX reference
# ----------------------------------------------------------------------------
def init_params(key, D, hidden, F, k):
    keys = jax.random.split(key, 10)

    def lin_w(kk, fan_in, fan_out):
        return (jax.random.normal(kk, (fan_in, fan_out), jnp.float32)
                / jnp.sqrt(jnp.float32(fan_in)))

    def lin_b(kk, fan_out):
        return 0.01 * jax.random.normal(kk, (1, fan_out), jnp.float32)

    w1, b1 = lin_w(keys[0], D, hidden), lin_b(keys[1], hidden)
    w2, b2 = lin_w(keys[2], hidden, F), lin_b(keys[3], F)
    wf1, bf1 = lin_w(keys[4], F, 2 * k), lin_b(keys[5], 2 * k)
    wf2, bf2 = lin_w(keys[6], 2 * k, 2 * k), lin_b(keys[7], 2 * k)
    wf3, bf3 = lin_w(keys[8], 2 * k, k), lin_b(keys[9], k)
    return (w1, b1, w2, b2, wf1, bf1, wf2, bf2, wf3, bf3)


def reference_forward(I, M, params):
    w1, b1, w2, b2, wf1, bf1, wf2, bf2, wf3, bf3 = params
    B, V, C, H, W = I.shape
    nM = M.shape[2]
    Ix = I[:, :, None] * M[:, :, :, None]                 # (B,V,nM,C,H,W)
    x = Ix.reshape(B * V * nM, C * H * W)
    e = jnp.maximum(x @ w1 + b1, 0.0) @ w2 + b2           # image encoder
    e = e.reshape(B, V, nM, -1).mean(axis=1).reshape(B * nM, -1)
    h1 = jnp.maximum(e @ wf1 + bf1, 0.0)
    h2 = jnp.maximum(h1 @ wf2 + bf2, 0.0)
    z = h2 @ wf3 + bf3
    return z.reshape(B, nM, -1)


if __name__ == "__main__":
    # small shapes consistent with the module's forward
    B, V, C, H, W = 2, 2, 4, 16, 16
    nM = 4                       # number of masks (B*nM = 8 rows)
    hidden, F, k = 128, 128, 32  # F == imageEncoder.F_I
    D = C * H * W

    key = jax.random.PRNGKey(0)
    k_i, k_m, k_p = jax.random.split(key, 3)
    I = jax.random.normal(k_i, (B, V, C, H, W), jnp.float32)
    M = (jax.random.uniform(k_m, (B, V, nM, H, W)) > 0.5).astype(jnp.float32)
    KT = None  # unused, kept for interface compatibility

    params = init_params(k_p, D, hidden, F, k)

    fwd = jax.jit(lambda I_, M_: object_encoder_2d_single_view(I_, M_, params, KT))
    z = jax.block_until_ready(fwd(I, M))
    assert z.shape == (B, nM, k), z.shape

    z_ref = reference_forward(I, M, params)
    max_err = float(jnp.max(jnp.abs(z - z_ref)))
    assert max_err < 1e-2, f"mismatch vs reference: {max_err}"

    print("KERNEL_OK")
</pallas_src>

<mosaic_0001>
module attributes {stable_mosaic.version = 11 : i64} {
  func.func @_fused_kernel(%arg0: i32, %arg1: i32, %arg2: memref<2x1x4x256xf32, #tpu.memory_space<vmem>>, %arg3: memref<2x1x4x256xf32, #tpu.memory_space<vmem>>, %arg4: memref<1024x128xf32, #tpu.memory_space<vmem>>, %arg5: memref<1x128xf32, #tpu.memory_space<vmem>>, %arg6: memref<128x128xf32, #tpu.memory_space<vmem>>, %arg7: memref<1x128xf32, #tpu.memory_space<vmem>>, %arg8: memref<128x128xf32, #tpu.memory_space<vmem>>, %arg9: memref<1x128xf32, #tpu.memory_space<vmem>>, %arg10: memref<128x128xf32, #tpu.memory_space<vmem>>, %arg11: memref<1x128xf32, #tpu.memory_space<vmem>>, %arg12: memref<128x128xf32, #tpu.memory_space<vmem>>, %arg13: memref<1x128xf32, #tpu.memory_space<vmem>>, %arg14: memref<8x128xf32, #tpu.memory_space<vmem>>, %arg15: memref<8x1024xf32, #tpu.memory_space<vmem>>, %arg16: memref<8x128xf32, #tpu.memory_space<vmem>>) attributes {dimension_semantics = [#tpu.dimension_semantics<parallel>, #tpu.dimension_semantics<arbitrary>], iteration_bounds = array<i64: 1, 2>, scalar_prefetch = 0 : i64, scratch_operands = 2 : i64, tpu.core_type = #tpu.core_type<tc>, window_params = [{transform_indices = @transform_0, window_bounds = array<i64: 2, 1, 4, 256>}, {transform_indices = @transform_1, window_bounds = array<i64: 2, 1, 4, 256>}, {pipeline_mode = #tpu.pipeline_mode<synchronous>, transform_indices = @transform_2, window_bounds = array<i64: 1024, 128>}, {pipeline_mode = #tpu.pipeline_mode<synchronous>, transform_indices = @transform_3, window_bounds = array<i64: 1, 128>}, {pipeline_mode = #tpu.pipeline_mode<synchronous>, transform_indices = @transform_4, window_bounds = array<i64: 128, 128>}, {pipeline_mode = #tpu.pipeline_mode<synchronous>, transform_indices = @transform_5, window_bounds = array<i64: 1, 128>}, {pipeline_mode = #tpu.pipeline_mode<synchronous>, transform_indices = @transform_6, window_bounds = array<i64: 128, 128>}, {pipeline_mode = #tpu.pipeline_mode<synchronous>, transform_indices = @transform_7, window_bounds = array<i64: 1, 128>}, {pipeline_mode = #tpu.pipeline_mode<synchronous>, transform_indices = @transform_8, window_bounds = array<i64: 128, 128>}, {pipeline_mode = #tpu.pipeline_mode<synchronous>, transform_indices = @transform_9, window_bounds = array<i64: 1, 128>}, {pipeline_mode = #tpu.pipeline_mode<synchronous>, transform_indices = @transform_10, window_bounds = array<i64: 128, 128>}, {pipeline_mode = #tpu.pipeline_mode<synchronous>, transform_indices = @transform_11, window_bounds = array<i64: 1, 128>}, {transform_indices = @transform_12, window_bounds = array<i64: 8, 128>}]} {
    %c0_i32 = arith.constant 0 : i32
    %0 = arith.cmpi eq, %arg1, %c0_i32 : i32
    %1 = arith.extui %0 : i1 to i32
    %c0_i32_0 = arith.constant 0 : i32
    %2 = arith.cmpi ne, %1, %c0_i32_0 : i32
    scf.if %2 {
      %cst_44 = arith.constant 0.000000e+00 : f32
      %62 = vector.broadcast %cst_44 : f32 to vector<8x128xf32>
      %c0_45 = arith.constant 0 : index
      %c0_46 = arith.constant 0 : index
      %63 = vector.load %arg16[%c0_45, %c0_46] : memref<8x128xf32, #tpu.memory_space<vmem>>, vector<8x128xf32>
      tpu.vector_store %arg16[%c0_45, %c0_46], %62 {strides = array<i32>} : memref<8x128xf32, #tpu.memory_space<vmem>>, vector<8x128xf32>,
    } else {
    }
    %c0 = arith.constant 0 : index
    %c0_1 = arith.constant 0 : index
    %c0_2 = arith.constant 0 : index
    %c0_3 = arith.constant 0 : index
    %3 = vector.load %arg3[%c0, %c0_1, %c0_2, %c0_3] : memref<2x1x4x256xf32, #tpu.memory_space<vmem>>, vector<1x1x4x256xf32>
    %4 = vector.shape_cast %3 : vector<1x1x4x256xf32> to vector<4x256xf32>
    %c0_4 = arith.constant 0 : index
    %c0_5 = arith.constant 0 : index
    %c0_6 = arith.constant 0 : index
    %c0_7 = arith.constant 0 : index
    %5 = vector.load %arg2[%c0_4, %c0_5, %c0_6, %c0_7] : memref<2x1x4x256xf32, #tpu.memory_space<vmem>>, vector<1x1x4x256xf32>
    %6 = vector.shape_cast %5 : vector<1x1x4x256xf32> to vector<4x256xf32>
    %7 = vector.extract_strided_slice %6 {offsets = [0, 0], sizes = [1, 256], strides = [1, 1]} : vector<4x256xf32> to vector<1x256xf32>
    %8 = vector.broadcast %7 : vector<1x256xf32> to vector<4x256xf32>
    %9 = arith.mulf %4, %8 : vector<4x256xf32>
    %c0_8 = arith.constant 0 : index
    %c0_9 = arith.constant 0 : index
    %10 = vector.load %arg15[%c0_8, %c0_9] : memref<8x1024xf32, #tpu.memory_space<vmem>>, vector<4x256xf32>
    tpu.vector_store %arg15[%c0_8, %c0_9], %9 {strides = array<i32>} : memref<8x1024xf32, #tpu.memory_space<vmem>>, vector<4x256xf32>,
    %11 = vector.extract_strided_slice %6 {offsets = [1, 0], sizes = [1, 256], strides = [1, 1]} : vector<4x256xf32> to vector<1x256xf32>
    %12 = vector.broadcast %11 : vector<1x256xf32> to vector<4x256xf32>
    %13 = arith.mulf %4, %12 : vector<4x256xf32>
    %c0_10 = arith.constant 0 : index
    %c256 = arith.constant 256 : index
    %14 = vector.load %arg15[%c0_10, %c256] : memref<8x1024xf32, #tpu.memory_space<vmem>>, vector<4x256xf32>
    tpu.vector_store %arg15[%c0_10, %c256], %13 {strides = array<i32>} : memref<8x1024xf32, #tpu.memory_space<vmem>>, vector<4x256xf32>,
    %15 = vector.extract_strided_slice %6 {offsets = [2, 0], sizes = [1, 256], strides = [1, 1]} : vector<4x256xf32> to vector<1x256xf32>
    %16 = vector.broadcast %15 : vector<1x256xf32> to vector<4x256xf32>
    %17 = arith.mulf %4, %16 : vector<4x256xf32>
    %c0_11 = arith.constant 0 : index
    %c512 = arith.constant 512 : index
    %18 = vector.load %arg15[%c0_11, %c512] : memref<8x1024xf32, #tpu.memory_space<vmem>>, vector<4x256xf32>
    tpu.vector_store %arg15[%c0_11, %c512], %17 {strides = array<i32>} : memref<8x1024xf32, #tpu.memory_space<vmem>>, vector<4x256xf32>,
    %19 = vector.extract_strided_slice %6 {offsets = [3, 0], sizes = [1, 256], strides = [1, 1]} : vector<4x256xf32> to vector<1x256xf32>
    %20 = vector.broadcast %19 : vector<1x256xf32> to vector<4x256xf32>
    %21 = arith.mulf %4, %20 : vector<4x256xf32>
    %c0_12 = arith.constant 0 : index
    %c768 = arith.constant 768 : index
    %22 = vector.load %arg15[%c0_12, %c768] : memref<8x1024xf32, #tpu.memory_space<vmem>>, vector<4x256xf32>
    tpu.vector_store %arg15[%c0_12, %c768], %21 {strides = array<i32>} : memref<8x1024xf32, #tpu.memory_space<vmem>>, vector<4x256xf32>,
    %c1 = arith.constant 1 : index
    %c0_13 = arith.constant 0 : index
    %c0_14 = arith.constant 0 : index
    %c0_15 = arith.constant 0 : index
    %23 = vector.load %arg3[%c1, %c0_13, %c0_14, %c0_15] : memref<2x1x4x256xf32, #tpu.memory_space<vmem>>, vector<1x1x4x256xf32>
    %24 = vector.shape_cast %23 : vector<1x1x4x256xf32> to vector<4x256xf32>
    %c1_16 = arith.constant 1 : index
    %c0_17 = arith.constant 0 : index
    %c0_18 = arith.constant 0 : index
    %c0_19 = arith.constant 0 : index
    %25 = vector.load %arg2[%c1_16, %c0_17, %c0_18, %c0_19] : memref<2x1x4x256xf32, #tpu.memory_space<vmem>>, vector<1x1x4x256xf32>
    %26 = vector.shape_cast %25 : vector<1x1x4x256xf32> to vector<4x256xf32>
    %27 = vector.extract_strided_slice %26 {offsets = [0, 0], sizes = [1, 256], strides = [1, 1]} : vector<4x256xf32> to vector<1x256xf32>
    %28 = vector.broadcast %27 : vector<1x256xf32> to vector<4x256xf32>
    %29 = arith.mulf %24, %28 : vector<4x256xf32>
    %c4 = arith.constant 4 : index
    %c0_20 = arith.constant 0 : index
    %30 = vector.load %arg15[%c4, %c0_20] : memref<8x1024xf32, #tpu.memory_space<vmem>>, vector<4x256xf32>
    tpu.vector_store %arg15[%c4, %c0_20], %29 {strides = array<i32>} : memref<8x1024xf32, #tpu.memory_space<vmem>>, vector<4x256xf32>,
    %31 = vector.extract_strided_slice %26 {offsets = [1, 0], sizes = [1, 256], strides = [1, 1]} : vector<4x256xf32> to vector<1x256xf32>
    %32 = vector.broadcast %31 : vector<1x256xf32> to vector<4x256xf32>
    %33 = arith.mulf %24, %32 : vector<4x256xf32>
    %c4_21 = arith.constant 4 : index
    %c256_22 = arith.constant 256 : index
    %34 = vector.load %arg15[%c4_21, %c256_22] : memref<8x1024xf32, #tpu.memory_space<vmem>>, vector<4x256xf32>
    tpu.vector_store %arg15[%c4_21, %c256_22], %33 {strides = array<i32>} : memref<8x1024xf32, #tpu.memory_space<vmem>>, vector<4x256xf32>,
    %35 = vector.extract_strided_slice %26 {offsets = [2, 0], sizes = [1, 256], strides = [1, 1]} : vector<4x256xf32> to vector<1x256xf32>
    %36 = vector.broadcast %35 : vector<1x256xf32> to vector<4x256xf32>
    %37 = arith.mulf %24, %36 : vector<4x256xf32>
    %c4_23 = arith.constant 4 : index
    %c512_24 = arith.constant 512 : index
    %38 = vector.load %arg15[%c4_23, %c512_24] : memref<8x1024xf32, #tpu.memory_space<vmem>>, vector<4x256xf32>
    tpu.vector_store %arg15[%c4_23, %c512_24], %37 {strides = array<i32>} : memref<8x1024xf32, #tpu.memory_space<vmem>>, vector<4x256xf32>,
    %39 = vector.extract_strided_slice %26 {offsets = [3, 0], sizes = [1, 256], strides = [1, 1]} : vector<4x256xf32> to vector<1x256xf32>
    %40 = vector.broadcast %39 : vector<1x256xf32> to vector<4x256xf32>
    %41 = arith.mulf %24, %40 : vector<4x256xf32>
    %c4_25 = arith.constant 4 : index
    %c768_26 = arith.constant 768 : index
    %42 = vector.load %arg15[%c4_25, %c768_26] : memref<8x1024xf32, #tpu.memory_space<vmem>>, vector<4x256xf32>
    tpu.vector_store %arg15[%c4_25, %c768_26], %41 {strides = array<i32>} : memref<8x1024xf32, #tpu.memory_space<vmem>>, vector<4x256xf32>,
    %c0_27 = arith.constant 0 : index
    %c0_28 = arith.constant 0 : index
    %43 = vector.load %arg15[%c0_27, %c0_28] : memref<8x1024xf32, #tpu.memory_space<vmem>>, vector<8x1024xf32>
    %c0_29 = arith.constant 0 : index
    %c0_30 = arith.constant 0 : index
    %44 = vector.load %arg4[%c0_29, %c0_30] : memref<1024x128xf32, #tpu.memory_space<vmem>>, vector<1024x128xf32>
    %cst = arith.constant dense<0.000000e+00> : vector<8x128xf32>
    %45 = tpu.matmul %43, %44, %cst {dimension_numbers = #tpu.dot_dimension_numbers<[1], [0], [0], [1], [0, 0, 1, 1], [], []>} : vector<8x1024xf32>, vector<1024x128xf32>, vector<8x128xf32> -> vector<8x128xf32>
    %c0_31 = arith.constant 0 : index
    %c0_32 = arith.constant 0 : index
    %46 = vector.load %arg5[%c0_31, %c0_32] : memref<1x128xf32, #tpu.memory_space<vmem>>, vector<1x128xf32>
    %47 = vector.broadcast %46 : vector<1x128xf32> to vector<8x128xf32>
    %48 = arith.addf %45, %47 : vector<8x128xf32>
    %cst_33 = arith.constant 0.000000e+00 : f32
    %49 = vector.broadcast %cst_33 : f32 to vector<8x128xf32>
    %50 = arith.maximumf %48, %49 : vector<8x128xf32>
    %c0_34 = arith.constant 0 : index
    %c0_35 = arith.constant 0 : index
    %51 = vector.load %arg6[%c0_34, %c0_35] : memref<128x128xf32, #tpu.memory_space<vmem>>, vector<128x128xf32>
    %cst_36 = arith.constant dense<0.000000e+00> : vector<8x128xf32>
    %52 = tpu.matmul %50, %51, %cst_36 {dimension_numbers = #tpu.dot_dimension_numbers<[1], [0], [0], [1], [0, 0, 1, 1], [], []>} : vector<8x128xf32>, vector<128x128xf32>, vector<8x128xf32> -> vector<8x128xf32>
    %c0_37 = arith.constant 0 : index
    %c0_38 = arith.constant 0 : index
    %53 = vector.load %arg7[%c0_37, %c0_38] : memref<1x128xf32, #tpu.memory_space<vmem>>, vector<1x128xf32>
    %54 = vector.broadcast %53 : vector<1x128xf32> to vector<8x128xf32>
    %55 = arith.addf %52, %54 : vector<8x128xf32>
    %c0_39 = arith.constant 0 : index
    %c0_40 = arith.constant 0 : index
    %56 = vector.load %arg16[%c0_39, %c0_40] : memref<8x128xf32, #tpu.memory_space<vmem>>, vector<8x128xf32>
    %57 = arith.addf %56, %55 : vector<8x128xf32>
    %c0_41 = arith.constant 0 : index
    %c0_42 = arith.constant 0 : index
    %58 = vector.load %arg16[%c0_41, %c0_42] : memref<8x128xf32, #tpu.memory_space<vmem>>, vector<8x128xf32>
    tpu.vector_store %arg16[%c0_41, %c0_42], %57 {strides = array<i32>} : memref<8x128xf32, #tpu.memory_space<vmem>>, vector<8x128xf32>,
    %c1_i32 = arith.constant 1 : i32
    %59 = arith.cmpi eq, %arg1, %c1_i32 : i32
    %60 = arith.extui %59 : i1 to i32
    %c0_i32_43 = arith.constant 0 : i32
    %61 = arith.cmpi ne, %60, %c0_i32_43 : i32
    scf.if %61 {
      %c0_44 = arith.constant 0 : index
      %c0_45 = arith.constant 0 : index
      %62 = vector.load %arg16[%c0_44, %c0_45] : memref<8x128xf32, #tpu.memory_space<vmem>>, vector<8x128xf32>
      %cst_46 = arith.constant 5.000000e-01 : f32
      %63 = vector.broadcast %cst_46 : f32 to vector<8x128xf32>
      %64 = arith.mulf %62, %63 : vector<8x128xf32>
      %c0_47 = arith.constant 0 : index
      %c0_48 = arith.constant 0 : index
      %65 = vector.load %arg8[%c0_47, %c0_48] : memref<128x128xf32, #tpu.memory_space<vmem>>, vector<128x128xf32>
      %cst_49 = arith.constant dense<0.000000e+00> : vector<8x128xf32>
      %66 = tpu.matmul %64, %65, %cst_49 {dimension_numbers = #tpu.dot_dimension_numbers<[1], [0], [0], [1], [0, 0, 1, 1], [], []>} : vector<8x128xf32>, vector<128x128xf32>, vector<8x128xf32> -> vector<8x128xf32>
      %c0_50 = arith.constant 0 : index
      %c0_51 = arith.constant 0 : index
      %67 = vector.load %arg9[%c0_50, %c0_51] : memref<1x128xf32, #tpu.memory_space<vmem>>, vector<1x128xf32>
      %68 = vector.broadcast %67 : vector<1x128xf32> to vector<8x128xf32>
      %69 = arith.addf %66, %68 : vector<8x128xf32>
      %cst_52 = arith.constant 0.000000e+00 : f32
      %70 = vector.broadcast %cst_52 : f32 to vector<8x128xf32>
      %71 = arith.maximumf %69, %70 : vector<8x128xf32>
      %c0_53 = arith.constant 0 : index
      %c0_54 = arith.constant 0 : index
      %72 = vector.load %arg10[%c0_53, %c0_54] : memref<128x128xf32, #tpu.memory_space<vmem>>, vector<128x128xf32>
      %cst_55 = arith.constant dense<0.000000e+00> : vector<8x128xf32>
      %73 = tpu.matmul %71, %72, %cst_55 {dimension_numbers = #tpu.dot_dimension_numbers<[1], [0], [0], [1], [0, 0, 1, 1], [], []>} : vector<8x128xf32>, vector<128x128xf32>, vector<8x128xf32> -> vector<8x128xf32>
      %c0_56 = arith.constant 0 : index
      %c0_57 = arith.constant 0 : index
      %74 = vector.load %arg11[%c0_56, %c0_57] : memref<1x128xf32, #tpu.memory_space<vmem>>, vector<1x128xf32>
      %75 = vector.broadcast %74 : vector<1x128xf32> to vector<8x128xf32>
      %76 = arith.addf %73, %75 : vector<8x128xf32>
      %cst_58 = arith.constant 0.000000e+00 : f32
      %77 = vector.broadcast %cst_58 : f32 to vector<8x128xf32>
      %78 = arith.maximumf %76, %77 : vector<8x128xf32>
      %c0_59 = arith.constant 0 : index
      %c0_60 = arith.constant 0 : index
      %79 = vector.load %arg12[%c0_59, %c0_60] : memref<128x128xf32, #tpu.memory_space<vmem>>, vector<128x128xf32>
      %cst_61 = arith.constant dense<0.000000e+00> : vector<8x128xf32>
      %80 = tpu.matmul %78, %79, %cst_61 {dimension_numbers = #tpu.dot_dimension_numbers<[1], [0], [0], [1], [0, 0, 1, 1], [], []>} : vector<8x128xf32>, vector<128x128xf32>, vector<8x128xf32> -> vector<8x128xf32>
      %c0_62 = arith.constant 0 : index
      %c0_63 = arith.constant 0 : index
      %81 = vector.load %arg13[%c0_62, %c0_63] : memref<1x128xf32, #tpu.memory_space<vmem>>, vector<1x128xf32>
      %82 = vector.broadcast %81 : vector<1x128xf32> to vector<8x128xf32>
      %83 = arith.addf %80, %82 : vector<8x128xf32>
      %c0_64 = arith.constant 0 : index
      %c0_65 = arith.constant 0 : index
      %84 = vector.load %arg14[%c0_64, %c0_65] : memref<8x128xf32, #tpu.memory_space<vmem>>, vector<8x128xf32>
      tpu.vector_store %arg14[%c0_64, %c0_65], %83 {strides = array<i32>} : memref<8x128xf32, #tpu.memory_space<vmem>>, vector<8x128xf32>,
    } else {
    }
    return
  }
  func.func @transform_0(%arg0: i32, %arg1: i32) -> (i32, i32, i32, i32) {
    %c0_i32 = arith.constant 0 : i32
    %c0_i32_0 = arith.constant 0 : i32
    %c0_i32_1 = arith.constant 0 : i32
    return %arg0, %arg1, %c0_i32, %c0_i32_0 : i32, i32, i32, i32
  }
  func.func @transform_1(%arg0: i32, %arg1: i32) -> (i32, i32, i32, i32) {
    %c0_i32 = arith.constant 0 : i32
    %c0_i32_0 = arith.constant 0 : i32
    %c0_i32_1 = arith.constant 0 : i32
    return %arg0, %arg1, %c0_i32, %c0_i32_0 : i32, i32, i32, i32
  }
  func.func @transform_2(%arg0: i32, %arg1: i32) -> (i32, i32) {
    %c0_i32 = arith.constant 0 : i32
    %c0_i32_0 = arith.constant 0 : i32
    %c0_i32_1 = arith.constant 0 : i32
    return %c0_i32, %c0_i32_0 : i32, i32
  }
  func.func @transform_3(%arg0: i32, %arg1: i32) -> (i32, i32) {
    %c0_i32 = arith.constant 0 : i32
    %c0_i32_0 = arith.constant 0 : i32
    %c0_i32_1 = arith.constant 0 : i32
    return %c0_i32, %c0_i32_0 : i32, i32
  }
  func.func @transform_4(%arg0: i32, %arg1: i32) -> (i32, i32) {
    %c0_i32 = arith.constant 0 : i32
    %c0_i32_0 = arith.constant 0 : i32
    %c0_i32_1 = arith.constant 0 : i32
    return %c0_i32, %c0_i32_0 : i32, i32
  }
  func.func @transform_5(%arg0: i32, %arg1: i32) -> (i32, i32) {
    %c0_i32 = arith.constant 0 : i32
    %c0_i32_0 = arith.constant 0 : i32
    %c0_i32_1 = arith.constant 0 : i32
    return %c0_i32, %c0_i32_0 : i32, i32
  }
  func.func @transform_6(%arg0: i32, %arg1: i32) -> (i32, i32) {
    %c0_i32 = arith.constant 0 : i32
    %c0_i32_0 = arith.constant 0 : i32
    %c0_i32_1 = arith.constant 0 : i32
    return %c0_i32, %c0_i32_0 : i32, i32
  }
  func.func @transform_7(%arg0: i32, %arg1: i32) -> (i32, i32) {
    %c0_i32 = arith.constant 0 : i32
    %c0_i32_0 = arith.constant 0 : i32
    %c0_i32_1 = arith.constant 0 : i32
    return %c0_i32, %c0_i32_0 : i32, i32
  }
  func.func @transform_8(%arg0: i32, %arg1: i32) -> (i32, i32) {
    %c0_i32 = arith.constant 0 : i32
    %c0_i32_0 = arith.constant 0 : i32
    %c0_i32_1 = arith.constant 0 : i32
    return %c0_i32, %c0_i32_0 : i32, i32
  }
  func.func @transform_9(%arg0: i32, %arg1: i32) -> (i32, i32) {
    %c0_i32 = arith.constant 0 : i32
    %c0_i32_0 = arith.constant 0 : i32
    %c0_i32_1 = arith.constant 0 : i32
    return %c0_i32, %c0_i32_0 : i32, i32
  }
  func.func @transform_10(%arg0: i32, %arg1: i32) -> (i32, i32) {
    %c0_i32 = arith.constant 0 : i32
    %c0_i32_0 = arith.constant 0 : i32
    %c0_i32_1 = arith.constant 0 : i32
    return %c0_i32, %c0_i32_0 : i32, i32
  }
  func.func @transform_11(%arg0: i32, %arg1: i32) -> (i32, i32) {
    %c0_i32 = arith.constant 0 : i32
    %c0_i32_0 = arith.constant 0 : i32
    %c0_i32_1 = arith.constant 0 : i32
    return %c0_i32, %c0_i32_0 : i32, i32
  }
  func.func @transform_12(%arg0: i32, %arg1: i32) -> (i32, i32) {
    %c0_i32 = arith.constant 0 : i32
    %c0_i32_0 = arith.constant 0 : i32
    return %arg0, %c0_i32 : i32, i32
  }
}

</mosaic_0001>

<bundles_post_ra>
// kernel: _lambda_.1
= control target key start
LH: loop header
LB: loop body
LE: loop exit
PB: predicated region body
PF: predicated region fallthrough
CT: control target
= control target key end

     0   :  { %s3091_s0 = inlined_call_operand.vmem [shape: f32[2,2,4,256], index: 0, kind: input, shape index: {}]   ;;  %s3092_s1 = inlined_call_operand.vmem [shape: f32[2,2,4,256], index: 1, kind: input, shape index: {}]   ;;  %s3093_s2 = inlined_call_operand.hbm [shape: f32[1024,128], index: 2, kind: input, shape index: {}]   ;;  %s3094_s3 = inlined_call_operand.vmem [shape: f32[1,128], index: 3, kind: input, shape index: {}]   ;;  %s3095_s4 = inlined_call_operand.hbm [shape: f32[128,128], index: 4, kind: input, shape index: {}]   ;;  %s3096_s5 = inlined_call_operand.vmem [shape: f32[1,128], index: 5, kind: input, shape index: {}]   ;;  %s3097_s6 = inlined_call_operand.hbm [shape: f32[128,128], index: 6, kind: input, shape index: {}]   ;;  %s3098_s7 = inlined_call_operand.vmem [shape: f32[1,128], index: 7, kind: input, shape index: {}]   ;;  %s3099_s8 = inlined_call_operand.vmem [shape: f32[128,128], index: 8, kind: input, shape index: {}]   ;;  %s3100_s9 = inlined_call_operand.vmem [shape: f32[1,128], index: 9, kind: input, shape index: {}]   ;;  %s3101_s10 = inlined_call_operand.vmem [shape: f32[128,128], index: 10, kind: input, shape index: {}]   ;;  %s3102_s11 = inlined_call_operand.vmem [shape: f32[1,128], index: 11, kind: input, shape index: {}]   ;;  %s3103_s12 = inlined_call_operand.hbm [shape: f32[8,128], index: 12, kind: output, shape index: {}]  }
   0x1   :  { %3112 = sst [smem:[#allocation18_spill]] %s3098_s7 }
   0x2   :  { %3113 = sst [smem:[#allocation19_spill]] %s3099_s8 }
   0x3   :  { %3114 = sst [smem:[#allocation20_spill]] %s3100_s9 }
   0x4   :  { %3115 = sst [smem:[#allocation21_spill]] %s3101_s10 }
   0x5   :  { %3116 = sst [smem:[#allocation22_spill]] %s3102_s11 }
   0x6   :  { %3117 = sst [smem:[#allocation23_spill]] %s3103_s12 }
   0x7   :  { %17 = vsyncpa [#allocation7], 0 }
   0x8   :  { %18 = vsyncpa [#allocation10], 0 }
   0x9   :  { %19 = vsyncpa [#allocation8], 0  ;;  %s2668_s21 = smov 0   ;;  %s2670_s22 = smov 0  }
   0xa   :  { %s2672_s23 = smov 0   ;;  %s2674_s24 = smov 0  }
   0xb   :  { %s2676_s25 = smov 0  }
   0xc LB: > { %s3104_s26 = sadd.s32 4294967295, %s2588_s25   ;;  %s34_s27 = sadd.s32 1, %s2584_s24  ;;  %s2588_s25 = sphi %s2676_s25, %s25_s25   ;;  %s2584_s24 = sphi %s2674_s24, %s3142_s24   ;;  %s2580_s23 = sphi %s2672_s23, %s3141_s23   ;;  %s2576_s22 = sphi %s2670_s22, %s3140_s22   ;;  %s2572_s21 = sphi %s2668_s21, %s3139_s21  }
   0xd   : > { %p35_p0 = scmp.ge.s32.totalorder %s34_s27, 2  ;;  %s46_s28 = sadd.s32 1, %s2576_s22 }
   0xe   : > { %p53_p1 = scmp.ne.s32.totalorder %s2576_s22, %s2572_s21  ;;  %p54_p2 = scmp.eq.s32.totalorder %s2588_s25, 0 }
   0xf   : > { %s3144_s27 = smov (%p35_p0, %s34_s27), 0  ;;  %p1737_p4 = scmp.ge.s32.totalorder %s2588_s25, 1 }
  0x10   : > { %3118 = sst [smem:[#allocation16_spill]] %s3144_s27  ;;  %p2701_p3 = por %p54_p2, %p53_p1 }
  0x11   : > { %s42_s30 = ssub.s32 %s2584_s24, %s3144_s27  ;;  %p334_p5 = scmp.lt.s32.totalorder %s2588_s25, 3 }
  0x12   : > { %s3119_s29 = scalar_select %p2701_p3, 1, 0 }
  0x13   : > { %p44_p6 = scmp.eq.s32.totalorder %s42_s30, 0  ;;  %p2709_p7 = pnand %p1737_p4, %p334_p5 }
  0x14   : > { %p2715_p8 = scmp.eq.s32.totalorder %s3104_s26, 0  ;;  %s2590_s17 = smov [#allocation9]  }
  0x15   : > { %s3120_s13 = scalar_select %p2709_p7, 1, 0 }
  0x16   : > { %s3121_s14 = scalar_select %p2715_p8, 1, 0 }
  0x17   : > { %s2720_s15 = scalar_select %p44_p6, %s2576_s22, %s46_s28  }
  0x18   : > { %p2357_p9 = pneg %p2709_p7  ;;  %s362_s18 = sshll.u32 %s2590_s17, 4  ;;  %s363_s18 = int_to_ptr.vmem [resolvable:$true] %s362_s18 }
  0x19   : > { %3122 = sst [smem:[#allocation17_spill]] %s2720_s15  ;;  %s2428_s30 = scalar_lea.hbm %s3095_s4, 2048 }
  0x1a   : > { %p2726_p10 = pnand %p2715_p8, %p2357_p9  ;;  %p2429_p11 = scmp.ne.s32.totalorder %s3095_s4, %s2428_s30 }
  0x1b   : > { %p2435_p1 = scmp.lt.u32.totalorder %s2428_s30, %s3095_s4 }
  0x1c   : > { %p2738_p12 = pneg %p2726_p10 }
  0x1e   : > { %p2431_p13 = pnand %p2738_p12, %p2429_p11 }
  0x20   : > { %p2432_p0 = pneg %p2431_p13 }
  0x22   : > { %p2437_p2 = pnand %p2435_p1, %p2432_p0 }
  0x24   : > { %2440 = shalt.err (!%p2437_p2)
}
  0x25   : > { %s2441_s19 = scalar_lea.vmem %s363_s18, 2048  ;;  %p2449_p9 = scmp.lt.s32.totalorder %s363_s18, %s363_s18 }
  0x26   : > { %p2442_p4 = scmp.ne.s32.totalorder %s363_s18, %s2441_s19  ;;  %p2450_p8 = scmp.lt.s32.totalorder %s2441_s19, %s2441_s19 }
  0x28   : > { %p2444_p5 = pnand %p2442_p4, %p2738_p12  ;;  %p2451_p7 = por %p2450_p8, %p2449_p9 }
  0x2a   : > { %p2445_p6 = pneg %p2444_p5 }
  0x2c   : > { %p2452_p3 = pnand %p2451_p7, %p2445_p6 }
  0x2e   : > { %2455 = shalt.err (!%p2452_p3)
}
  0x2f   : > { %s2591_s26 = smov 128   ;;  %s2592_s27 = smov 8  }
  0x30   : > { %2363 = dma.hbm_to_vmem [thread:$0]  (!%p2726_p10), %s3095_s4, 2048, %s363_s18, [#allocation10], %s2591_s26, %s2591_s26, %s2592_s27  }
  0x31   : > { %s2593_s30 = smov [#allocation6]   ;;  %s2594_s12 = smov [#allocation11]  }
  0x32   : > { %s346_s17 = sshll.u32 %s2593_s30, 4  ;;  %s378_s11 = sshll.u32 %s2594_s12, 4  ;;  %s347_s17 = int_to_ptr.vmem [resolvable:$true] %s346_s17  ;;  %s2757_s11 = int_to_ptr.vmem [resolvable:$true] %s378_s11 }
  0x33   : > { %s2456_s7 = scalar_lea.hbm %s3093_s2, 16384 }
  0x34   : > { %p2457_p3 = scmp.ne.s32.totalorder %s3093_s2, %s2456_s7  ;;  %p2463_p11 = scmp.lt.u32.totalorder %s2456_s7, %s3093_s2 }
  0x36   : > { %p2459_p7 = pnand %p2457_p3, %p2738_p12 }
  0x38   : > { %p2460_p8 = pneg %p2459_p7 }
  0x3a   : > { %p2465_p13 = pnand %p2463_p11, %p2460_p8 }
  0x3c   : > { %2468 = shalt.err (!%p2465_p13)
}
  0x3d   : > { %s2469_s12 = scalar_lea.vmem %s347_s17, 16384  ;;  %p2477_p4 = scmp.lt.s32.totalorder %s347_s17, %s347_s17 }
  0x3e   : > { %p2470_p0 = scmp.ne.s32.totalorder %s347_s17, %s2469_s12  ;;  %p2478_p5 = scmp.lt.s32.totalorder %s2469_s12, %s2469_s12 }
  0x40   : > { %p2472_p1 = pnand %p2470_p0, %p2738_p12  ;;  %p2479_p6 = por %p2478_p5, %p2477_p4 }
  0x42   : > { %p2473_p2 = pneg %p2472_p1 }
  0x44   : > { %p2480_p9 = pnand %p2479_p6, %p2473_p2 }
  0x46   : > { %2483 = shalt.err (!%p2480_p9)
}
  0x47   : > { %2360 = dma.hbm_to_vmem [thread:$0]  (!%p2726_p10), %s3093_s2, 16384, %s347_s17, [#allocation7], %s2591_s26, %s2591_s26, %s2592_s27  }
  0x48   : > { %s2484_s20 = scalar_lea.hbm %s3097_s6, 2048 }
  0x49   : > { %p2485_p3 = scmp.ne.s32.totalorder %s3097_s6, %s2484_s20  ;;  %p2491_p11 = scmp.lt.u32.totalorder %s2484_s20, %s3097_s6 }
  0x4b   : > { %p2487_p7 = pnand %p2485_p3, %p2738_p12 }
  0x4d   : > { %p2488_p8 = pneg %p2487_p7 }
  0x4f   : > { %p2493_p13 = pnand %p2491_p11, %p2488_p8 }
  0x51   : > { %2496 = shalt.err (!%p2493_p13)
}
  0x52   : > { %s2497_s17 = scalar_lea.vmem %s2757_s11, 2048  ;;  %p2505_p4 = scmp.lt.s32.totalorder %s2757_s11, %s2757_s11 }
  0x53   : > { %p2498_p0 = scmp.ne.s32.totalorder %s2757_s11, %s2497_s17  ;;  %p2506_p5 = scmp.lt.s32.totalorder %s2497_s17, %s2497_s17 }
  0x55   : > { %p2500_p1 = pnand %p2498_p0, %p2738_p12  ;;  %p2507_p6 = por %p2506_p5, %p2505_p4 }
  0x57   : > { %p2501_p2 = pneg %p2500_p1 }
  0x59   : > { %p2508_p9 = pnand %p2507_p6, %p2501_p2 }
  0x5b   : > { %2511 = shalt.err (!%p2508_p9)
}
  0x5c   : > { %2366 = dma.hbm_to_vmem [thread:$0]  (!%p2726_p10), %s3097_s6, 2048, %s2757_s11, [#allocation10], %s2591_s26, %s2591_s26, %s2592_s27  }
  0x5d   : > { %p1741_p3 = scmp.ge.s32.totalorder %s2588_s25, 2 }
  0x5e   : > { %p3125_p12 = scmp.ne.s32.totalorder (!%p1741_p3), %s3119_s29, 0 }
  0x5f   : > { %403 = sbr.rel (%p1741_p3) target bundleno = 118 (0x76), region = 56 }
  0x66   : > { %406 = sbr.rel (!%p3125_p12) target bundleno = 109 (0x6d), region = 60  ;;  %s408_s28 = sand.u32 (%p3125_p12), 1, %s2576_s22  }
  0x67   : > { %s1767_s7 = sshll.u32 (%p3125_p12), %s2584_s24, 3  ;;  %s1742_s9 = sshll.u32 (%p3125_p12), %s408_s28, 4 }
  0x68   : > { %s416_s20 = scalar_lea.vmem (%p3125_p12), %s3091_s0, %s1767_s7  ;;  %s410_s30 = scalar_lea.vmem (%p3125_p12), [#allocation4], %s1742_s9 }
  0x69   : > { %v446_v0 = vld [vmem:[%s416_s20] sm:$0xff] (%p3125_p12)  ;;  %v448_v1 = vld [vmem:[%s416_s20 + $0x10] sm:$0xff] (%p3125_p12) }
  0x6a   : > { %447 = vst [vmem:[%s410_s30] sm:$0xff] (%p3125_p12), %v446_v0  ;;  %449 = vst [vmem:[%s410_s30 + $0x8] sm:$0xff] (%p3125_p12), %v448_v1 }
  0x6d PF: > { %p3126_p10 = scmp.ne.s32.totalorder %s3119_s29, 0 }
  0x6e   : > { %s457_s11 = sand.u32 (%p3126_p10), 1, %s2576_s22   ;;  %s1768_s26 = sshll.u32 (%p3126_p10), %s2584_s24, 3 }
  0x6f   : > { %455 = sbr.rel (!%p3126_p10) target bundleno = 118 (0x76), region = 98  ;;  %s1745_s27 = sshll.u32 (%p3126_p10), %s457_s11, 4 }
  0x70   : > { %s465_s18 = scalar_lea.vmem (%p3126_p10), %s3092_s1, %s1768_s26  ;;  %s459_s17 = scalar_lea.vmem (%p3126_p10), [#allocation5], %s1745_s27 }
  0x71   : > { %v495_v2 = vld [vmem:[%s465_s18] sm:$0xff] (%p3126_p10)  ;;  %v497_v3 = vld [vmem:[%s465_s18 + $0x10] sm:$0xff] (%p3126_p10) }
  0x72   : > { %496 = vst [vmem:[%s459_s17] sm:$0xff] (%p3126_p10), %v495_v2  ;;  %498 = vst [vmem:[%s459_s17 + $0x8] sm:$0xff] (%p3126_p10), %v497_v3 }
  0x76 PF: > { %p3127_p7 = scmp.ne.s32.totalorder %s3120_s13, 0 }
  0x77   : > { %s510_s29 = sand.u32 (!%p3127_p7), 1, %s2572_s21   ;;  %p3128_p8 = scmp.ne.s32.totalorder (!%p3127_p7), %s3121_s14, 0 }
  0x78   : > { %507 = sbr.rel (%p3127_p7) target bundleno = 1335 (0x537), region = 136  ;;  %s2824_s12 = sshll.u32 (!%p3127_p7), %s510_s29, 4 }
  0x79   : > { %s512_s8 = scalar_lea.vmem (!%p3127_p7), [#allocation4], %s2824_s12  ;;  %s519_s28 = scalar_lea.vmem (!%p3127_p7), [#allocation5], %s2824_s12 }
  0x7f   : > { %2559 = dma.done.wait (%p3128_p8), [#allocation7], 16384  }
  0x80   : > { %2561 = vsyncadd (%p3128_p8), [#allocation7], 4294950912 }
  0x81   : > { %2563 = dma.done.wait (%p3128_p8), [#allocation10], 4096  }
  0x82   : > { %2565 = vsyncadd (%p3128_p8), [#allocation10], 4294963200  ;;  %p1754_p11 = scmp.ne.s32.totalorder %s2580_s23, 0 }
  0x83   : > { %v2595_v4 = vmov (!%p1754_p11), 0.0  }
  0x84   : > { %574 = sbr.rel (%p1754_p11) target bundleno = 139 (0x8b), region = 160  ;;  %575 = vst [vmem:[#allocation3] sm:$0xff] (!%p1754_p11), %v2595_v4 }
  0x8b PF: > { %v832_v5 = vld [vmem:[#allocation6 + $0x80] sm:$0xff]  ;;  %v833_v6 = vld [vmem:[#allocation6 + $0x88] sm:$0xff]  ;;  %v834_v16 = vld [vmem:[#allocation6 + $0x90] sm:$0xff]  ;;  %v579_v52 = vlaneseq  ;;  %vm2597_vm0 = vmmov 0   ;;  %p1759_p13 = scmp.ne.s32.totalorder %s2580_s23, 1 }
  0x8c   : > { %v816_v7 = vld [vmem:[#allocation6] sm:$0xff]  ;;  %v2117_v8 = vpack.c.bf16 %v833_v6, %v832_v5  ;;  %v817_v9 = vld [vmem:[#allocation6 + $0x8] sm:$0xff]  ;;  %v835_v18 = vld [vmem:[#allocation6 + $0x98] sm:$0xff]  ;;  %vm2600_vm1 = vmmov (!%p1759_p13), 0   ;;  %s3129_s16 = sld [smem:[#allocation19_spill]] (!%p1759_p13)  ;;  %s3131_s30 = sld [smem:[#allocation18_spill]] (!%p1759_p13) }
  0x8d   : > { %v864_v10 = vld [vmem:[#allocation6 + $0x180] sm:$0xff]  ;;  %v865_v11 = vld [vmem:[#allocation6 + $0x188] sm:$0xff]  ;;  %v2119_v12 = vpack.c.bf16 %v817_v9, %v816_v7  ;;  %v818_v19 = vld [vmem:[#allocation6 + $0x10] sm:$0xff]  ;;  %v2121_v21 = vpack.c.bf16 %v835_v18, %v834_v16  ;;  %v2837_v2 = vshrl.u32 %v579_v52, 7  ;;  %s3132_s17 = sld [smem:[#allocation20_spill]] (!%p1759_p13) }
  0x8e   : > { %v2149_v13 = vpack.c.bf16 %v865_v11, %v864_v10  ;;  %v848_v14 = vld [vmem:[#allocation6 + $0x100] sm:$0xff]  ;;  %v849_v15 = vld [vmem:[#allocation6 + $0x108] sm:$0xff]  ;;  %2118 = vmatprep.subr.bf16.mxu0 %v2117_v8  ;;  %v819_v20 = vld [vmem:[#allocation6 + $0x18] sm:$0xff] }
  0x8f   : > { %v2151_v17 = vpack.c.bf16 %v849_v15, %v848_v14  ;;  %2120 = vmatpush3.bf16.msra.mxu0 %v2119_v12  ;;  %v2123_v22 = vpack.c.bf16 %v819_v20, %v818_v19  ;;  %v866_v23 = vld [vmem:[#allocation6 + $0x190] sm:$0xff]  ;;  %v867_v24 = vld [vmem:[#allocation6 + $0x198] sm:$0xff]  ;;  %v836_v28 = vld [vmem:[#allocation6 + $0xa0] sm:$0xff]  ;;  %v581_v19 = vsub.s32 0, %v2837_v2  ;;  %v585_v20 = vsub.s32 4, %v2837_v2 }
  0x90   : > { %2150 = vmatprep.subr.bf16.mxu1 %v2149_v13  ;;  %v850_v25 = vld [vmem:[#allocation6 + $0x110] sm:$0xff]  ;;  %v2153_v26 = vpack.c.bf16 %v867_v24, %v866_v23  ;;  %v851_v27 = vld [vmem:[#allocation6 + $0x118] sm:$0xff]  ;;  %v837_v29 = vld [vmem:[#allocation6 + $0xa8] sm:$0xff]  ;;  %2122 = vmatprep.subr.bf16.mxu0 %v2121_v21  ;;  %v2844_v21 = vsub.s32 1, %v2837_v2  ;;  %v613_v24 = vsub.s32 5, %v2837_v2 }
  0x91   : > { %2152 = vmatpush3.bf16.msra.mxu1 %v2151_v17  ;;  %v2155_v30 = vpack.c.bf16 %v851_v27, %v850_v25  ;;  %v2125_v31 = vpack.c.bf16 %v837_v29, %v836_v28  ;;  %v820_v32 = vld [vmem:[#allocation6 + $0x20] sm:$0xff]  ;;  %v821_v33 = vld [vmem:[#allocation6 + $0x28] sm:$0xff]  ;;  %v838_v40 = vld [vmem:[#allocation6 + $0xb0] sm:$0xff] }
  0x92   : > { %v868_v34 = vld [vmem:[#allocation6 + $0x1a0] sm:$0xff]  ;;  %2154 = vmatprep.subr.bf16.mxu1 %v2153_v26  ;;  %v869_v35 = vld [vmem:[#allocation6 + $0x1a8] sm:$0xff]  ;;  %v2127_v38 = vpack.c.bf16 %v821_v33, %v820_v32  ;;  %v839_v41 = vld [vmem:[#allocation6 + $0xb8] sm:$0xff] }
  0x93   : > { %v852_v36 = vld [vmem:[#allocation6 + $0x120] sm:$0xff]  ;;  %v853_v37 = vld [vmem:[#allocation6 + $0x128] sm:$0xff]  ;;  %2124 = vmatpush3.bf16.msra.mxu0 %v2123_v22  ;;  %v2157_v39 = vpack.c.bf16 %v869_v35, %v868_v34  ;;  %v822_v42 = vld [vmem:[#allocation6 + $0x30] sm:$0xff]  ;;  %v2129_v44 = vpack.c.bf16 %v839_v41, %v838_v40 }
  0x94   : > { %2126 = vmatprep.subr.bf16.mxu0 %v2125_v31  ;;  %v2159_v43 = vpack.c.bf16 %v853_v37, %v852_v36  ;;  %v823_v45 = vld [vmem:[#allocation6 + $0x38] sm:$0xff]  ;;  %v870_v46 = vld [vmem:[#allocation6 + $0x1b0] sm:$0xff]  ;;  %v840_v51 = vld [vmem:[#allocation6 + $0xc0] sm:$0xff] }
  0x95   : > { %2156 = vmatpush3.bf16.msra.mxu1 %v2155_v30  ;;  %v871_v47 = vld [vmem:[#allocation6 + $0x1b8] sm:$0xff]  ;;  %v854_v49 = vld [vmem:[#allocation6 + $0x130] sm:$0xff]  ;;  %v841_v53 = vld [vmem:[#allocation6 + $0xc8] sm:$0xff]  ;;  %v2131_v54 = vpack.c.bf16 %v823_v45, %v822_v42 }
  0x96   : > { %2158 = vmatprep.subr.bf16.mxu1 %v2157_v39  ;;  %v2161_v48 = vpack.c.bf16 %v871_v47, %v870_v46  ;;  %v855_v50 = vld [vmem:[#allocation6 + $0x138] sm:$0xff]  ;;  %v872_v55 = vld [vmem:[#allocation6 + $0x1c0] sm:$0xff]  ;;  %v873_v56 = vld [vmem:[#allocation6 + $0x1c8] sm:$0xff]  ;;  %v2133_v58 = vpack.c.bf16 %v841_v53, %v840_v51 }
  0x97   : > { %2128 = vmatpush3.bf16.msra.mxu0 %v2127_v38  ;;  %v2163_v57 = vpack.c.bf16 %v855_v50, %v854_v49  ;;  %v824_v59 = vld [vmem:[#allocation6 + $0x40] sm:$0xff]  ;;  %v825_v60 = vld [vmem:[#allocation6 + $0x48] sm:$0xff]  ;;  %v2165_v62 = vpack.c.bf16 %v873_v56, %v872_v55  ;;  %v842_v0 = vld [vmem:[#allocation6 + $0xd0] sm:$0xff] }
  0x98   : > { %2130 = vmatprep.subr.bf16.mxu0 %v2129_v44  ;;  %v856_v61 = vld [vmem:[#allocation6 + $0x140] sm:$0xff]  ;;  %v857_v63 = vld [vmem:[#allocation6 + $0x148] sm:$0xff]  ;;  %v843_v1 = vld [vmem:[#allocation6 + $0xd8] sm:$0xff]  ;;  %v2135_v6 = vpack.c.bf16 %v825_v60, %v824_v59 }
  0x99   : > { %2160 = vmatpush3.bf16.msra.mxu1 %v2159_v43  ;;  %v826_v3 = vld [vmem:[#allocation6 + $0x50] sm:$0xff]  ;;  %v875_v5 = vld [vmem:[#allocation6 + $0x1d8] sm:$0xff]  ;;  %v2167_v10 = vpack.c.bf16 %v857_v63, %v856_v61  ;;  %v2137_v11 = vpack.c.bf16 %v843_v1, %v842_v0  ;;  %v844_v12 = vld [vmem:[#allocation6 + $0xe0] sm:$0xff] }
  0x9a   : > { %2162 = vmatprep.subr.bf16.mxu1 %v2161_v48  ;;  %v874_v4 = vld [vmem:[#allocation6 + $0x1d0] sm:$0xff]  ;;  %v827_v7 = vld [vmem:[#allocation6 + $0x58] sm:$0xff]  ;;  %v845_v13 = vld [vmem:[#allocation6 + $0xe8] sm:$0xff] }
  0x9b   : > { %2132 = vmatpush3.bf16.msra.mxu0 %v2131_v54  ;;  %v858_v8 = vld [vmem:[#allocation6 + $0x150] sm:$0xff]  ;;  %v859_v9 = vld [vmem:[#allocation6 + $0x158] sm:$0xff]  ;;  %v2839_v14 = vld [vmem:[#allocation6 + $0x60] sm:$0xff]  ;;  %v2169_v15 = vpack.c.bf16 %v875_v5, %v874_v4  ;;  %v2139_v25 = vpack.c.bf16 %v827_v7, %v826_v3  ;;  %v2141_v27 = vpack.c.bf16 %v845_v13, %v844_v12  ;;  %v637_v4 = vsub.s32 2, %v2837_v2 }
  0x9c   : > { %2134 = vmatprep.subr.bf16.mxu0 %v2133_v58  ;;  %v829_v16 = vld [vmem:[#allocation6 + $0x68] sm:$0xff]  ;;  %v876_v17 = vld [vmem:[#allocation6 + $0x1e0] sm:$0xff]  ;;  %v2171_v26 = vpack.c.bf16 %v859_v9, %v858_v8  ;;  %v846_v30 = vld [vmem:[#allocation6 + $0xf0] sm:$0xff]  ;;  %v641_v12 = vsub.s32 6, %v2837_v2 }
  0x9d   : > { %2164 = vmatpush3.bf16.msra.mxu1 %v2163_v57  ;;  %v877_v18 = vld [vmem:[#allocation6 + $0x1e8] sm:$0xff]  ;;  %v860_v22 = vld [vmem:[#allocation6 + $0x160] sm:$0xff]  ;;  %v2143_v28 = vpack.c.bf16 %v829_v16, %v2839_v14  ;;  %v847_v31 = vld [vmem:[#allocation6 + $0xf8] sm:$0xff] }
  0x9e   : > { %2166 = vmatprep.subr.bf16.mxu1 %v2165_v62  ;;  %v861_v23 = vld [vmem:[#allocation6 + $0x168] sm:$0xff]  ;;  %v2173_v29 = vpack.c.bf16 %v877_v18, %v876_v17  ;;  %v2850_v32 = vld [vmem:[%s512_s8] sm:$0xff]  ;;  %v879_v39 = vld [vmem:[#allocation6 + $0x1f8] sm:$0xff]  ;;  %v2145_v44 = vpack.c.bf16 %v847_v31, %v846_v30 }
  0x9f   : > { %2136 = vmatpush3.bf16.msra.mxu0 %v2135_v6  ;;  %v2175_v33 = vpack.c.bf16 %v861_v23, %v860_v22  ;;  %v582_v34 = vrot.slane %v2850_v32, %v581_v19  ;;  %v586_v35 = vrot.slane %v2850_v32, %v585_v20  ;;  %v2856_v36 = vld [vmem:[%s512_s8 + $0x8] sm:$0xff]  ;;  %v610_v37 = vrot.slane %v2850_v32, %v2844_v21  ;;  %v878_v38 = vld [vmem:[#allocation6 + $0x1f0] sm:$0xff]  ;;  %v896_v59 = vld [vmem:[#allocation6 + $0x280] sm:$0xff]  ;;  %s3130_s8 = sld [smem:[#allocation21_spill]] (!%p1759_p13) }
  0xa0   : > { %2138 = vmatprep.subr.bf16.mxu0 %v2137_v11  ;;  %v699_v40 = vrot.slane %v2856_v36, %v581_v19  ;;  %v703_v41 = vrot.slane %v2856_v36, %v585_v20  ;;  %v614_v42 = vrot.slane %v2850_v32, %v613_v24  ;;  %v727_v43 = vrot.slane %v2856_v36, %v2844_v21  ;;  %v830_v45 = vld [vmem:[#allocation6 + $0x70] sm:$0xff]  ;;  %v831_v46 = vld [vmem:[#allocation6 + $0x78] sm:$0xff]  ;;  %v897_v60 = vld [vmem:[#allocation6 + $0x288] sm:$0xff] }
  0xa1   : > { %2168 = vmatpush3.bf16.msra.mxu1 %v2167_v10  ;;  %v592_v47 = vrot.slane %v582_v34, %v581_v19  ;;  %v596_v48 = vrot.slane %v586_v35, %v581_v19  ;;  %v620_v49 = vrot.slane %v610_v37, %v2844_v21  ;;  %v862_v50 = vld [vmem:[#allocation6 + $0x170] sm:$0xff]  ;;  %v863_v51 = vld [vmem:[#allocation6 + $0x178] sm:$0xff]  ;;  %v2177_v56 = vpack.c.bf16 %v879_v39, %v878_v38  ;;  %v928_v1 = vld [vmem:[#allocation6 + $0x380] sm:$0xff] }
  0xa2   : > { %2170 = vmatprep.subr.bf16.mxu1 %v2169_v15  ;;  %v2868_v52 = vld [vmem:[%s519_s28] sm:$0xff]  ;;  %v709_v53 = vrot.slane %v699_v40, %v581_v19  ;;  %v713_v54 = vrot.slane %v703_v41, %v581_v19  ;;  %v624_v55 = vrot.slane %v614_v42, %v2844_v21  ;;  %v2873_v58 = vld [vmem:[%s519_s28 + $0x8] sm:$0xff]  ;;  %v731_v61 = vrot.slane %v2856_v36, %v613_v24  ;;  %s3133_s28 = sld [smem:[#allocation22_spill]] (!%p1759_p13) }
  0xa3   : > { %2140 = vmatpush3.bf16.msra.mxu0 %v2139_v25  ;;  %v599_v57 = vcombine.low %v592_v47, %v596_v48  ;;  %v737_v62 = vrot.slane %v727_v43, %v2844_v21  ;;  %v929_v3 = vld [vmem:[#allocation6 + $0x388] sm:$0xff]  ;;  %v2147_v5 = vpack.c.bf16 %v831_v46, %v830_v45  ;;  %v2179_v6 = vpack.c.bf16 %v863_v51, %v862_v50  ;;  %v880_v25 = vld [vmem:[#allocation6 + $0x200] sm:$0xff]  ;;  %v898_v30 = vld [vmem:[#allocation6 + $0x290] sm:$0xff] }
  0xa4   : > { %2142 = vmatprep.subr.bf16.mxu0 %v2141_v27  ;;  %v716_v63 = vcombine.low %v709_v53, %v713_v54  ;;  %v627_v0 = vcombine.low %v620_v49, %v624_v55  ;;  %v741_v8 = vrot.slane %v731_v61, %v2844_v21  ;;  %v2181_v10 = vpack.c.bf16 %v897_v60, %v896_v59  ;;  %v899_v31 = vld [vmem:[#allocation6 + $0x298] sm:$0xff]  ;;  %v912_v35 = vld [vmem:[#allocation6 + $0x300] sm:$0xff]  ;;  %v913_v40 = vld [vmem:[#allocation6 + $0x308] sm:$0xff] }
  0xa5   : > { %2172 = vmatpush3.bf16.msra.mxu1 %v2171_v26  ;;  %v601_v7 = vmul.f32 %v599_v57, %v2868_v52  ;;  %v2213_v15 = vpack.c.bf16 %v929_v3, %v928_v1  ;;  %v2885_v19 = vsub.s32 3, %v2837_v2  ;;  %v638_v20 = vrot.slane %v2850_v32, %v637_v4  ;;  %v881_v26 = vld [vmem:[#allocation6 + $0x208] sm:$0xff]  ;;  %v882_v41 = vld [vmem:[#allocation6 + $0x210] sm:$0xff]  ;;  %v883_v42 = vld [vmem:[#allocation6 + $0x218] sm:$0xff] }
  0xa6   : > { %2174 = vmatprep.subr.bf16.mxu1 %v2173_v29  ;;  %v718_v9 = vmul.f32 %v2873_v58, %v716_v63  ;;  %v629_v11 = vmul.f32 %v627_v0, %v2868_v52  ;;  %v744_v14 = vcombine.low %v737_v62, %v741_v8  ;;  %v642_v21 = vrot.slane %v2850_v32, %v641_v12  ;;  %v930_v47 = vld [vmem:[#allocation6 + $0x390] sm:$0xff]  ;;  %v931_v48 = vld [vmem:[#allocation6 + $0x398] sm:$0xff]  ;;  %v900_v53 = vld [vmem:[#allocation6 + $0x2a0] sm:$0xff] }
  0xa7   : > { %2144 = vmatpush3.bf16.msra.mxu0 %v2143_v28  ;;  %v603_v13 = vcombine.high %v601_v7, %v601_v7  ;;  %605 = vst [vmem:[#allocation2] sm:$0xf] %v601_v7  ;;  %v669_v22 = vsub.s32 7, %v2837_v2  ;;  %v755_v24 = vrot.slane %v2856_v36, %v637_v4  ;;  %v648_v27 = vrot.slane %v638_v20, %v637_v4  ;;  %v901_v54 = vld [vmem:[#allocation6 + $0x2a8] sm:$0xff]  ;;  %v914_v60 = vld [vmem:[#allocation6 + $0x310] sm:$0xff]  ;;  %v915_v3 = vld [vmem:[#allocation6 + $0x318] sm:$0xff] }
  0xa8   : > { %2146 = vmatprep.subr.bf16.mxu0 %v2145_v44  ;;  %723 = vst [vmem:[#allocation2 + $0x8] sm:$0xf0] %v718_v9  ;;  %v720_v16 = vcombine.low %v718_v9, %v718_v9  ;;  %v631_v17 = vcombine.high %v629_v11, %v629_v11  ;;  %633 = vst [vmem:[#allocation2 + $0x10] sm:$0xf] %v629_v11  ;;  %v746_v18 = vmul.f32 %v2873_v58, %v744_v14  ;;  %v932_v8 = vld [vmem:[#allocation6 + $0x3a0] sm:$0xff]  ;;  %v933_v9 = vld [vmem:[#allocation6 + $0x3a8] sm:$0xff] }
  0xa9   : > { %2176 = vmatpush3.bf16.msra.mxu1 %v2175_v33  ;;  %606 = vst [vmem:[#allocation2 + $0x8] sm:$0xf] %v603_v13  ;;  %v652_v28 = vrot.slane %v642_v21, %v637_v4  ;;  %v759_v29 = vrot.slane %v2856_v36, %v641_v12  ;;  %v765_v33 = vrot.slane %v755_v24, %v637_v4  ;;  %v902_v12 = vld [vmem:[#allocation6 + $0x2b0] sm:$0xff]  ;;  %v903_v13 = vld [vmem:[#allocation6 + $0x2b8] sm:$0xff]  ;;  %v917_v20 = vld [vmem:[#allocation6 + $0x328] sm:$0xff] }
  0xaa   : > { %2178 = vmatprep.subr.bf16.mxu1 %v2177_v56  ;;  %722 = vst [vmem:[#allocation2] sm:$0xf0] %v720_v16  ;;  %634 = vst [vmem:[#allocation2 + $0x18] sm:$0xf] %v631_v17  ;;  %v748_v23 = vcombine.low %v746_v18, %v746_v18  ;;  %v666_v34 = vrot.slane %v2850_v32, %v2885_v19  ;;  %v670_v38 = vrot.slane %v2850_v32, %v669_v22  ;;  %v886_v21 = vld [vmem:[#allocation6 + $0x230] sm:$0xff] }
  0xab   : > { %2148 = vmatpush3.bf16.msra.mxu0 %v2147_v5  ;;  %751 = vst [vmem:[#allocation2 + $0x18] sm:$0xf0] %v746_v18  ;;  %v655_v2 = vcombine.low %v648_v27, %v652_v28  ;;  %v769_v37 = vrot.slane %v759_v29, %v637_v4  ;;  %v2183_v39 = vpack.c.bf16 %v881_v26, %v880_v25  ;;  %v884_v4 = vld [vmem:[#allocation6 + $0x220] sm:$0xff]  ;;  %v885_v5 = vld [vmem:[#allocation6 + $0x228] sm:$0xff]  ;;  %v934_v24 = vld [vmem:[#allocation6 + $0x3b0] sm:$0xff] }
  0xac   : > { %2182 = vmatprep.subr.bf16.mxu0 %v2181_v10  ;;  %750 = vst [vmem:[#allocation2 + $0x10] sm:$0xf0] %v748_v23  ;;  %v676_v43 = vrot.slane %v666_v34, %v2885_v19  ;;  %v783_v44 = vrot.slane %v2856_v36, %v2885_v19  ;;  %v2185_v46 = vpack.c.bf16 %v899_v31, %v898_v30  ;;  %v887_v23 = vld [vmem:[#allocation6 + $0x238] sm:$0xff]  ;;  %v904_v26 = vld [vmem:[#allocation6 + $0x2c0] sm:$0xff]  ;;  %v905_v27 = vld [vmem:[#allocation6 + $0x2c8] sm:$0xff] }
  0xad   : > { %2180 = vmatpush3.bf16.msra.mxu1 %v2179_v6  ;;  %v657_v49 = vmul.f32 %v655_v2, %v2868_v52  ;;  %v772_v50 = vcombine.low %v765_v33, %v769_v37  ;;  %v680_v51 = vrot.slane %v670_v38, %v2885_v19  ;;  %v787_v55 = vrot.slane %v2856_v36, %v669_v22  ;;  %v935_v25 = vld [vmem:[#allocation6 + $0x3b8] sm:$0xff]  ;;  %v918_v30 = vld [vmem:[#allocation6 + $0x330] sm:$0xff]  ;;  %v889_v37 = vld [vmem:[#allocation6 + $0x248] sm:$0xff] }
  0xae   : > { %2214 = vmatprep.subr.bf16.mxu1 %v2213_v15  ;;  %v793_v56 = vrot.slane %v783_v44, %v2885_v19  ;;  %v2215_v59 = vpack.c.bf16 %v913_v40, %v912_v35  ;;  %v2187_v0 = vpack.c.bf16 %v883_v42, %v882_v41  ;;  %v2217_v1 = vpack.c.bf16 %v931_v48, %v930_v47  ;;  %v919_v34 = vld [vmem:[#allocation6 + $0x338] sm:$0xff]  ;;  %v888_v35 = vld [vmem:[#allocation6 + $0x240] sm:$0xff]  ;;  %v906_v40 = vld [vmem:[#allocation6 + $0x2d0] sm:$0xff] }
  0xaf   : > { %v659_v61 = vcombine.high %v657_v49, %v657_v49  ;;  %v774_v62 = vmul.f32 %v2873_v58, %v772_v50  ;;  %661 = vst [vmem:[#allocation2 + $0x20] sm:$0xf] %v657_v49  ;;  %v683_v63 = vcombine.low %v676_v43, %v680_v51  ;;  %v797_v36 = vrot.slane %v787_v55, %v2885_v19  ;;  %v916_v19 = vld [vmem:[#allocation6 + $0x320] sm:$0xff]  ;;  %v907_v41 = vld [vmem:[#allocation6 + $0x2d8] sm:$0xff]  ;;  %v890_v47 = vld [vmem:[#allocation6 + $0x250] sm:$0xff] }
  0xb0   : > { %v809_v45 = vld [vmem:[#allocation2 + $0x8] sm:$0xff]  ;;  %v2189_v7 = vpack.c.bf16 %v901_v54, %v900_v53  ;;  %v2219_v15 = vpack.c.bf16 %v915_v3, %v914_v60  ;;  %v2191_v17 = vpack.c.bf16 %v885_v5, %v884_v4  ;;  %v2221_v18 = vpack.c.bf16 %v933_v9, %v932_v8  ;;  %v891_v48 = vld [vmem:[#allocation6 + $0x258] sm:$0xff]  ;;  %v938_v50 = vld [vmem:[#allocation6 + $0x3d0] sm:$0xff] }
  0xb1   : > { %1015 = vmatprep.mubr.f32.mxu0 %v809_v45  ;;  %v808_v32 = vld [vmem:[#allocation2] sm:$0xff]  ;;  %662 = vst [vmem:[#allocation2 + $0x28] sm:$0xf] %v659_v61  ;;  %779 = vst [vmem:[#allocation2 + $0x28] sm:$0xf0] %v774_v62  ;;  %v776_v10 = vcombine.low %v774_v62, %v774_v62  ;;  %v685_v11 = vmul.f32 %v683_v63, %v2868_v52  ;;  %v800_v14 = vcombine.low %v793_v56, %v797_v36  ;;  %v936_v38 = vld [vmem:[#allocation6 + $0x3c0] sm:$0xff] }
  0xb2   : > { %1016 = vmatmul.mubr.f32.vlgmr.msra.gmra.mrb[0].mxu0 %v808_v32  ;;  %v811_v57 = vld [vmem:[#allocation2 + $0x18] sm:$0xff]  ;;  %v2193_v52 = vpack.c.bf16 %v903_v13, %v902_v12  ;;  %v2223_v29 = vpack.c.bf16 %v917_v20, %v916_v19  ;;  %v2195_v31 = vpack.c.bf16 %v887_v23, %v886_v21  ;;  %v2225_v33 = vpack.c.bf16 %v935_v25, %v934_v24  ;;  %v920_v43 = vld [vmem:[#allocation6 + $0x340] sm:$0xff]  ;;  %v939_v51 = vld [vmem:[#allocation6 + $0x3d8] sm:$0xff] }
  0xb3   : > { %1085 = vmatprep.mubr.f32.mxu1 %v811_v57  ;;  %2184 = vmatpush3.bf16.msra.mxu0 %v2183_v39  ;;  %v810_v6 = vld [vmem:[#allocation2 + $0x10] sm:$0xff]  ;;  %778 = vst [vmem:[#allocation2 + $0x20] sm:$0xf0] %v776_v10  ;;  %v687_v16 = vcombine.high %v685_v11, %v685_v11  ;;  %689 = vst [vmem:[#allocation2 + $0x30] sm:$0xf] %v685_v11  ;;  %v802_v22 = vmul.f32 %v2873_v58, %v800_v14  ;;  %v908_v53 = vld [vmem:[#allocation6 + $0x2e0] sm:$0xff] }
  0xb4   : > { %2186 = vmatprep.subr.bf16.mxu0 %v2185_v46  ;;  %1086 = vmatmul.mubr.f32.vlgmr.msra.gmra.mrb[0].mxu1 %v810_v6  ;;  %v2197_v2 = vpack.c.bf16 %v905_v27, %v904_v26  ;;  %v937_v39 = vld [vmem:[#allocation6 + $0x3c8] sm:$0xff]  ;;  %v2227_v42 = vpack.c.bf16 %v919_v34, %v918_v30  ;;  %v2199_v44 = vpack.c.bf16 %v889_v37, %v888_v35  ;;  %v923_v60 = vld [vmem:[#allocation6 + $0x358] sm:$0xff]  ;;  %v892_v61 = vld [vmem:[#allocation6 + $0x260] sm:$0xff]  ;;  %v2596_v24 = vmov 0.0|0.0  }
  0xb5   : > { %2216 = vmatpush3.bf16.msra.mxu1 %v2215_v59  ;;  %690 = vst [vmem:[#allocation2 + $0x38] sm:$0xf] %v687_v16  ;;  %807 = vst [vmem:[#allocation2 + $0x38] sm:$0xf0] %v802_v22  ;;  %v804_v28 = vcombine.low %v802_v22, %v802_v22  ;;  %v2229_v45 = vpack.c.bf16 %v937_v39, %v936_v38  ;;  %v921_v46 = vld [vmem:[#allocation6 + $0x348] sm:$0xff]  ;;  %v2201_v49 = vpack.c.bf16 %v907_v41, %v906_v40  ;;  %v922_v59 = vld [vmem:[#allocation6 + $0x350] sm:$0xff] }
  0xb6   : > { %2218 = vmatprep.subr.bf16.mxu1 %v2217_v1  ;;  %v909_v54 = vld [vmem:[#allocation6 + $0x2e8] sm:$0xff]  ;;  %v2231_v55 = vpack.c.bf16 %v921_v46, %v920_v43  ;;  %v2203_v56 = vpack.c.bf16 %v891_v48, %v890_v47  ;;  %v2233_v57 = vpack.c.bf16 %v939_v51, %v938_v50  ;;  %v910_v3 = vld [vmem:[#allocation6 + $0x2f0] sm:$0xff]  ;;  %v911_v4 = vld [vmem:[#allocation6 + $0x2f8] sm:$0xff]  ;;  %v2235_v5 = vpack.c.bf16 %v923_v60, %v922_v59 }
  0xb7   : > { %2188 = vmatpush3.bf16.msra.mxu0 %v2187_v0  ;;  %806 = vst [vmem:[#allocation2 + $0x30] sm:$0xf0] %v804_v28  ;;  %v2205_v62 = vpack.c.bf16 %v909_v54, %v908_v53  ;;  %v893_v63 = vld [vmem:[#allocation6 + $0x268] sm:$0xff]  ;;  %v940_v0 = vld [vmem:[#allocation6 + $0x3e0] sm:$0xff]  ;;  %v894_v9 = vld [vmem:[#allocation6 + $0x270] sm:$0xff]  ;;  %v2209_v10 = vpack.c.bf16 %v911_v4, %v910_v3  ;;  %v2598_v46 = vmov 0.0  }
  0xb8   : > { %2190 = vmatprep.subr.bf16.mxu0 %v2189_v7  ;;  %v813_v58 = vld [vmem:[#allocation2 + $0x28] sm:$0xff]  ;;  %v941_v1 = vld [vmem:[#allocation6 + $0x3e8] sm:$0xff]  ;;  %v2207_v36 = vpack.c.bf16 %v893_v63, %v892_v61  ;;  %v895_v11 = vld [vmem:[#allocation6 + $0x278] sm:$0xff] }
  0xb9   : > { %2220 = vmatpush3.bf16.msra.mxu1 %v2219_v15  ;;  %1155 = vmatprep.mubr.f32.mxu0 %v813_v58  ;;  %v2237_v6 = vpack.c.bf16 %v941_v1, %v940_v0  ;;  %v924_v7 = vld [vmem:[#allocation6 + $0x360] sm:$0xff]  ;;  %v925_v8 = vld [vmem:[#allocation6 + $0x368] sm:$0xff]  ;;  %v942_v12 = vld [vmem:[#allocation6 + $0x3f0] sm:$0xff]  ;;  %v2211_v15 = vpack.c.bf16 %v895_v11, %v894_v9  ;;  %v2599_v11 = vmov (!%p1759_p13), 0.0|0.0  }
  0xba   : > { %2222 = vmatprep.subr.bf16.mxu1 %v2221_v18  ;;  %v943_v13 = vld [vmem:[#allocation6 + $0x3f8] sm:$0xff]  ;;  %v2239_v14 = vpack.c.bf16 %v925_v8, %v924_v7  ;;  %v1232_v22 = vld [vmem:[#allocation9] sm:$0xff]  ;;  %v1234_v23 = vld [vmem:[#allocation9 + $0x10] sm:$0xff] }
  0xbb   : > { %2192 = vmatpush3.bf16.msra.mxu0 %v2191_v17  ;;  %v2241_v16 = vpack.c.bf16 %v943_v13, %v942_v12  ;;  %v926_v17 = vld [vmem:[#allocation6 + $0x370] sm:$0xff]  ;;  %v927_v18 = vld [vmem:[#allocation6 + $0x378] sm:$0xff]  ;;  %v1236_v28 = vld [vmem:[#allocation9 + $0x20] sm:$0xff] }
  0xbc   : > { %2194 = vmatprep.subr.bf16.mxu0 %v2193_v52  ;;  %v815_v32 = vld [vmem:[#allocation2 + $0x38] sm:$0xff]  ;;  %v2243_v19 = vpack.c.bf16 %v927_v18, %v926_v17  ;;  %v812_v20 = vld [vmem:[#allocation2 + $0x20] sm:$0xff]  ;;  %v1233_v52 = vld [vmem:[#allocation9 + $0x8] sm:$0xff] }
  0xbd   : > { %2224 = vmatpush3.bf16.msra.mxu1 %v2223_v29  ;;  %1225 = vmatprep.mubr.f32.mxu1 %v815_v32  ;;  %v2246_v25 = vpack.c.bf16 %v1233_v52, %v1232_v22  ;;  %v1235_v26 = vld [vmem:[#allocation9 + $0x18] sm:$0xff]  ;;  %v1237_v29 = vld [vmem:[#allocation9 + $0x28] sm:$0xff]  ;;  %v1240_v35 = vld [vmem:[#allocation9 + $0x40] sm:$0xff] }
  0xbe   : > { %2226 = vmatprep.subr.bf16.mxu1 %v2225_v33  ;;  %v814_v21 = vld [vmem:[#allocation2 + $0x30] sm:$0xff]  ;;  %v2249_v27 = vpack.c.bf16 %v1235_v26, %v1234_v23  ;;  %v2252_v30 = vpack.c.bf16 %v1237_v29, %v1236_v28  ;;  %v1239_v33 = vld [vmem:[#allocation9 + $0x38] sm:$0xff]  ;;  %v1242_v37 = vld [vmem:[#allocation9 + $0x50] sm:$0xff] }
  0xbf   : > { %2196 = vmatpush3.bf16.msra.mxu0 %v2195_v31  ;;  %v1238_v31 = vld [vmem:[#allocation9 + $0x30] sm:$0xff]  ;;  %v1241_v58 = vld [vmem:[#allocation9 + $0x48] sm:$0xff]  ;;  %v1243_v38 = vld [vmem:[#allocation9 + $0x58] sm:$0xff] }
  0xc0   : > { %2198 = vmatprep.subr.bf16.mxu0 %v2197_v2  ;;  %v2255_v34 = vpack.c.bf16 %v1239_v33, %v1238_v31  ;;  %v2258_v2 = vpack.c.bf16 %v1241_v58, %v1240_v35  ;;  %v2261_v39 = vpack.c.bf16 %v1243_v38, %v1242_v37  ;;  %v1244_v40 = vld [vmem:[#allocation9 + $0x60] sm:$0xff]  ;;  %v1245_v41 = vld [vmem:[#allocation9 + $0x68] sm:$0xff]  ;;  %v1246_v43 = vld [vmem:[#allocation9 + $0x70] sm:$0xff] }
  0xc1   : > { %2228 = vmatpush3.bf16.msra.mxu1 %v2227_v42  ;;  %v2264_v42 = vpack.c.bf16 %v1245_v41, %v1244_v40  ;;  %v1757_v48 = vld [vmem:[%s3094_s3] ss:$0 sm:$0xff]  ;;  %v1334_v8 = vld [vmem:[#allocation11] sm:$0xff] (!%p1759_p13)  ;;  %v1335_v9 = vld [vmem:[#allocation11 + $0x8] sm:$0xff] (!%p1759_p13) }
  0xc2   : > { %2230 = vmatprep.subr.bf16.mxu1 %v2229_v45  ;;  %v1758_v3 = vld [vmem:[%s3096_s5] ss:$0 sm:$0xff]  ;;  %v2270_v12 = vpack.c.bf16 (!%p1759_p13), %v1335_v9, %v1334_v8  ;;  %v1339_v17 = vld [vmem:[#allocation11 + $0x28] sm:$0xff] (!%p1759_p13)  ;;  %v1340_v23 = vld [vmem:[#allocation11 + $0x30] sm:$0xff] (!%p1759_p13) }
  0xc3   : > { %2200 = vmatpush3.bf16.msra.mxu0 %v2199_v44  ;;  %v1247_v44 = vld [vmem:[#allocation9 + $0x78] sm:$0xff]  ;;  %v1342_v29 = vld [vmem:[#allocation11 + $0x40] sm:$0xff] (!%p1759_p13)  ;;  %v1434_v33 = vld [vmem:[%s3129_s16 + $0x30] sm:$0xff] (!%p1759_p13) }
  0xc4   : > { %2202 = vmatprep.subr.bf16.mxu0 %v2201_v49  ;;  %v2267_v45 = vpack.c.bf16 %v1247_v44, %v1246_v43  ;;  %v1337_v13 = vld [vmem:[#allocation11 + $0x18] sm:$0xff] (!%p1759_p13)  ;;  %v1344_v58 = vld [vmem:[#allocation11 + $0x50] sm:$0xff] (!%p1759_p13)  ;;  %v1346_v41 = vld [vmem:[#allocation11 + $0x60] sm:$0xff] (!%p1759_p13) }
  0xc5   : > { %2232 = vmatpush3.bf16.msra.mxu1 %v2231_v55  ;;  %v1428_v18 = vld [vmem:[%s3129_s16] sm:$0xff] (!%p1759_p13)  ;;  %v1438_v44 = vld [vmem:[%s3129_s16 + $0x50] sm:$0xff] (!%p1759_p13)  ;;  %v1531_v9 = vld [vmem:[%s3130_s8 + $0x48] sm:$0xff] (!%p1759_p13) }
  0xc6   : > { %2234 = vmatprep.subr.bf16.mxu1 %v2233_v57  ;;  %v1432_v26 = vld [vmem:[%s3129_s16 + $0x20] sm:$0xff] (!%p1759_p13) }
  0xc7   : > { %2204 = vmatpush3.bf16.msra.mxu0 %v2203_v56  ;;  %v1436_v38 = vld [vmem:[%s3129_s16 + $0x40] sm:$0xff] (!%p1759_p13) }
  0xc8   : > { %2206 = vmatprep.subr.bf16.mxu0 %v2205_v62  ;;  %v1530_v8 = vld [vmem:[%s3130_s8 + $0x40] sm:$0xff] (!%p1759_p13) }
  0xc9   : > { %2236 = vmatpush3.bf16.msra.mxu1 %v2235_v5  ;;  %v1325_v5 = vld [vmem:[#allocation3] sm:$0xff] }
  0xca   : > { %2238 = vmatprep.subr.bf16.mxu1 %v2237_v6 }
  0xcb   : > { %2208 = vmatpush3.bf16.msra.mxu0 %v2207_v36 }
  0xcc   : > { %2210 = vmatprep.subr.bf16.mxu0 %v2209_v10  ;;  %v1336_v10 = vld [vmem:[#allocation11 + $0x10] sm:$0xff] (!%p1759_p13) }
  0xcd   : > { %2240 = vmatpush3.bf16.msra.mxu1 %v2239_v14  ;;  %v2601_v14 = vmov (!%p1759_p13), 0.0  }
  0xce   : > { %2242 = vmatprep.subr.bf16.mxu1 %v2241_v16  ;;  %v1338_v16 = vld [vmem:[#allocation11 + $0x20] sm:$0xff] (!%p1759_p13) }
  0xcf   : > { %2212 = vmatpush3.bf16.msra.mxu0 %v2211_v15  ;;  %v2273_v15 = vpack.c.bf16 (!%p1759_p13), %v1337_v13, %v1336_v10  ;;  %v2276_v22 = vpack.c.bf16 (!%p1759_p13), %v1339_v17, %v1338_v16  ;;  %v2330_v10 = vpack.c.bf16 (!%p1759_p13), %v1531_v9, %v1530_v8  ;;  %v1533_v13 = vld [vmem:[%s3130_s8 + $0x58] sm:$0xff] (!%p1759_p13)  ;;  %v1535_v16 = vld [vmem:[%s3130_s8 + $0x68] sm:$0xff] (!%p1759_p13) }
  0xd0   : > { %2245 = vmatprep.subr.bf16.mxu0 %v2596_v24 }
  0xd1   : > { %2244 = vmatpush3.bf16.msra.mxu1 %v2243_v19  ;;  %v1429_v19 = vld [vmem:[%s3129_s16 + $0x8] sm:$0xff] (!%p1759_p13) }
  0xd2   : > { %1156 = vmatmul.mubr.f32.vlgmr.msra.gmra.mrb[2].mxu0 %v812_v20  ;;  %2293 = vmatprep.subr.bf16.mxu1 (!%p1759_p13), %v2599_v11  ;;  %v1430_v20 = vld [vmem:[%s3129_s16 + $0x10] sm:$0xff] (!%p1759_p13)  ;;  %v2294_v52 = vpack.c.bf16 (!%p1759_p13), %v1429_v19, %v1428_v18  ;;  %v1760_v18 = vld [vmem:[%s3131_s30] ss:$0 sm:$0xff] (!%p1759_p13) }
  0xd3   : > { %2247 = vmatpush3.bf16.msra.mxu0 %v2246_v25  ;;  %2009 = vmatprep.mubr.msk.f32.mxu0 %vm2597_vm0, %v2598_v46 }
  0xd4   : > { %1226 = vmatmul.mubr.f32.vlgmr.msra.gmra.mrb[2].mxu1 %v814_v21  ;;  %2248 = vmatprep.subr.bf16.mxu0 %v2596_v24  ;;  %v1431_v21 = vld [vmem:[%s3129_s16 + $0x18] sm:$0xff] (!%p1759_p13) }
  0xd5   : > { %2079 = vmatprep.mubr.msk.f32.mxu1 (!%p1759_p13), %vm2600_vm1, %v2601_v14  ;;  %2295 = vmatpush3.bf16.msra.mxu1 (!%p1759_p13), %v2294_v52  ;;  %v2297_v25 = vpack.c.bf16 (!%p1759_p13), %v1431_v21, %v1430_v20  ;;  %v1536_v52 = vld [vmem:[%s3130_s8 + $0x70] sm:$0xff] (!%p1759_p13) }
  0xd6   : > { %2296 = vmatprep.subr.bf16.mxu1 (!%p1759_p13), %v2599_v11 }
  0xd7   : > { %2250 = vmatpush3.bf16.msra.mxu0 %v2249_v27  ;;  %v1433_v27 = vld [vmem:[%s3129_s16 + $0x28] sm:$0xff] (!%p1759_p13) }
  0xd8   : > { %2251 = vmatprep.subr.bf16.mxu0 %v2596_v24  ;;  %v2300_v31 = vpack.c.bf16 (!%p1759_p13), %v1433_v27, %v1432_v26 }
  0xd9   : > { %2298 = vmatpush3.bf16.msra.mxu1 (!%p1759_p13), %v2297_v25 }
  0xda   : > { %2299 = vmatprep.subr.bf16.mxu1 (!%p1759_p13), %v2599_v11 }
  0xdb   : > { %2253 = vmatpush3.bf16.msra.mxu0 %v2252_v30  ;;  %v1343_v30 = vld [vmem:[#allocation11 + $0x48] sm:$0xff] (!%p1759_p13) }
  0xdc   : > { %2254 = vmatprep.subr.bf16.mxu0 %v2596_v24  ;;  %v2282_v35 = vpack.c.bf16 (!%p1759_p13), %v1343_v30, %v1342_v29  ;;  %v1762_v29 = vld [vmem:[%s3133_s28] ss:$0 sm:$0xff] (!%p1759_p13) }
  0xdd   : > { %2301 = vmatpush3.bf16.msra.mxu1 (!%p1759_p13), %v2300_v31 }
  0xde   : > { %2302 = vmatprep.subr.bf16.mxu1 (!%p1759_p13), %v2599_v11 }
  0xdf   : > { %2256 = vmatpush3.bf16.msra.mxu0 %v2255_v34  ;;  %v1435_v34 = vld [vmem:[%s3129_s16 + $0x38] sm:$0xff] (!%p1759_p13) }
  0xe0   : > { %2257 = vmatprep.subr.bf16.mxu0 %v2596_v24  ;;  %v2303_v37 = vpack.c.bf16 (!%p1759_p13), %v1435_v34, %v1434_v33 }
  0xe2   : > { %2304 = vmatpush3.bf16.msra.mxu1 (!%p1759_p13), %v2303_v37 }
  0xe3   : > { %2259 = vmatpush3.bf16.msra.mxu0 %v2258_v2  ;;  %v1345_v2 = vld [vmem:[#allocation11 + $0x58] sm:$0xff] (!%p1759_p13)  ;;  %2305 = vmatprep.subr.bf16.mxu1 (!%p1759_p13), %v2599_v11 }
  0xe4   : > { %2260 = vmatprep.subr.bf16.mxu0 %v2596_v24  ;;  %v2285_v40 = vpack.c.bf16 (!%p1759_p13), %v1345_v2, %v1344_v58 }
  0xe7   : > { %2262 = vmatpush3.bf16.msra.mxu0 %v2261_v39  ;;  %v1437_v39 = vld [vmem:[%s3129_s16 + $0x48] sm:$0xff] (!%p1759_p13) }
  0xe8   : > { %2263 = vmatprep.subr.bf16.mxu0 %v2596_v24  ;;  %v2306_v43 = vpack.c.bf16 (!%p1759_p13), %v1437_v39, %v1436_v38 }
  0xea   : > { %2307 = vmatpush3.bf16.msra.mxu1 (!%p1759_p13), %v2306_v43 }
  0xeb   : > { %2265 = vmatpush3.bf16.msra.mxu0 %v2264_v42  ;;  %v1347_v42 = vld [vmem:[#allocation11 + $0x68] sm:$0xff] (!%p1759_p13)  ;;  %2308 = vmatprep.subr.bf16.mxu1 (!%p1759_p13), %v2599_v11 }
  0xec   : > { %2266 = vmatprep.subr.bf16.mxu0 %v2596_v24  ;;  %v1341_v24 = vld [vmem:[#allocation11 + $0x38] sm:$0xff] (!%p1759_p13)  ;;  %v2288_v46 = vpack.c.bf16 (!%p1759_p13), %v1347_v42, %v1346_v41 }
  0xed   : > { %v2279_v28 = vpack.c.bf16 (!%p1759_p13), %v1341_v24, %v1340_v23  ;;  %v1537_v23 = vld [vmem:[%s3130_s8 + $0x78] sm:$0xff] (!%p1759_p13) }
  0xee   : > { %v2339_v24 = vpack.c.bf16 (!%p1759_p13), %v1537_v23, %v1536_v52 }
  0xef   : > { %2268 = vmatpush3.bf16.msra.mxu0 %v2267_v45  ;;  %v1439_v45 = vld [vmem:[%s3129_s16 + $0x58] sm:$0xff] (!%p1759_p13) }
  0xf0   : > { %2269 = vmatprep.subr.bf16.mxu0 (!%p1759_p13), %v2599_v11 }
 0x185   : > { %v1801_v47 = vpop.f32.mrb[0].mxu0 }
 0x186   : > { %v1802_v49 = vpop.f32.mrb[1].mxu0 }
 0x187   : > { %v1803_v50 = vadd.f32 %v1802_v49, %v1801_v47  ;;  %v1836_v51 = vpop.f32.mrb[0].mxu1  ;;  %v1348_v47 = vld [vmem:[#allocation11 + $0x70] sm:$0xff] (!%p1759_p13)  ;;  %v2309_v49 = vpack.c.bf16 (!%p1759_p13), %v1439_v45, %v1438_v44 }
 0x188   : > { %v1837_v53 = vpop.f32.mrb[1].mxu1 }
 0x189   : > { %v1018_v32 = vadd.f32 %v1803_v50, %v1757_v48  ;;  %v1838_v54 = vadd.f32 %v1837_v53, %v1836_v51  ;;  %v1349_v48 = vld [vmem:[#allocation11 + $0x78] sm:$0xff] (!%p1759_p13)  ;;  %v1441_v51 = vld [vmem:[%s3129_s16 + $0x68] sm:$0xff] (!%p1759_p13)  ;;  %2310 = vmatpush3.bf16.msra.mxu1 (!%p1759_p13), %v2309_v49 }
 0x18a   : > { %v1440_v50 = vld [vmem:[%s3129_s16 + $0x60] sm:$0xff] (!%p1759_p13)  ;;  %2311 = vmatprep.subr.bf16.mxu1 (!%p1759_p13), %v2599_v11 }
 0x18b   : > { %v1088_v55 = vadd.f32 %v1838_v54, %v1018_v32  ;;  %v2291_v32 = vpack.c.bf16 (!%p1759_p13), %v1349_v48, %v1348_v47  ;;  %v2312_v54 = vpack.c.bf16 (!%p1759_p13), %v1441_v51, %v1440_v50 }
 0x18d   : > { %2313 = vmatpush3.bf16.msra.mxu1 (!%p1759_p13), %v2312_v54 }
 0x18e   : > { %2314 = vmatprep.subr.bf16.mxu1 (!%p1759_p13), %v2599_v11 }
 0x1a5   : > { %v1871_v56 = vpop.f32.mrb[2].mxu0 }
 0x1a6   : > { %v1872_v57 = vpop.f32.mrb[3].mxu0 }
 0x1a7   : > { %v1873_v59 = vadd.f32 %v1872_v57, %v1871_v56  ;;  %v1906_v60 = vpop.f32.mrb[2].mxu1  ;;  %v1442_v56 = vld [vmem:[%s3129_s16 + $0x70] sm:$0xff] (!%p1759_p13)  ;;  %v1443_v57 = vld [vmem:[%s3129_s16 + $0x78] sm:$0xff] (!%p1759_p13) }
 0x1a8   : > { %v1907_v62 = vpop.f32.mrb[3].mxu1 }
 0x1a9   : > { %v1158_v61 = vadd.f32 %v1873_v59, %v1088_v55  ;;  %v1908_v63 = vadd.f32 %v1907_v62, %v1906_v60  ;;  %v2315_v59 = vpack.c.bf16 (!%p1759_p13), %v1443_v57, %v1442_v56  ;;  %v1522_v60 = vld [vmem:[%s3130_s8] sm:$0xff] (!%p1759_p13)  ;;  %v1524_v62 = vld [vmem:[%s3130_s8 + $0x10] sm:$0xff] (!%p1759_p13) }
 0x1ab   : > { %v1228_v0 = vadd.f32 %v1908_v63, %v1158_v61  ;;  %2316 = vmatpush3.bf16.msra.mxu1 (!%p1759_p13), %v2315_v59  ;;  %v1523_v61 = vld [vmem:[%s3130_s8 + $0x8] sm:$0xff] (!%p1759_p13) }
 0x1ac   : > { %v2318_v63 = vpack.c.bf16 (!%p1759_p13), %v1523_v61, %v1522_v60 }
 0x1ad   : > { %v1231_v1 = vmax.f32 %v1228_v0, 0.0  ;;  %v1525_v0 = vld [vmem:[%s3130_s8 + $0x18] sm:$0xff] (!%p1759_p13) }
 0x1af   : > { %2010 = vmatmul.mubr.f32.vlgmr.msra.gmra.mrb[4].mxu0 %v1231_v1  ;;  %v2321_v1 = vpack.c.bf16 (!%p1759_p13), %v1525_v0, %v1524_v62 }
 0x1b0   : > { %2044 = vmatprep.mubr.msk.f32.mxu0 (!%p1759_p13), %vm2600_vm1, %v2601_v14  ;;  %2271 = vmatpush3.bf16.msra.mxu0 (!%p1759_p13), %v2270_v12  ;;  %v1532_v12 = vld [vmem:[%s3130_s8 + $0x50] sm:$0xff] (!%p1759_p13) }
 0x1b1   : > { %2272 = vmatprep.subr.bf16.mxu0 (!%p1759_p13), %v2599_v11 }
 0x1b4   : > { %2274 = vmatpush3.bf16.msra.mxu0 (!%p1759_p13), %v2273_v15  ;;  %v1534_v15 = vld [vmem:[%s3130_s8 + $0x60] sm:$0xff] (!%p1759_p13) }
 0x1b5   : > { %2275 = vmatprep.subr.bf16.mxu0 (!%p1759_p13), %v2599_v11  ;;  %v2336_v17 = vpack.c.bf16 (!%p1759_p13), %v1535_v16, %v1534_v15 }
 0x1b8   : > { %2277 = vmatpush3.bf16.msra.mxu0 (!%p1759_p13), %v2276_v22 }
 0x1b9   : > { %2278 = vmatprep.subr.bf16.mxu0 (!%p1759_p13), %v2599_v11 }
 0x1bc   : > { %2280 = vmatpush3.bf16.msra.mxu0 (!%p1759_p13), %v2279_v28 }
 0x1bd   : > { %2281 = vmatprep.subr.bf16.mxu0 (!%p1759_p13), %v2599_v11 }
 0x1c0   : > { %2283 = vmatpush3.bf16.msra.mxu0 (!%p1759_p13), %v2282_v35 }
 0x1c1   : > { %2284 = vmatprep.subr.bf16.mxu0 (!%p1759_p13), %v2599_v11 }
 0x1c4   : > { %2286 = vmatpush3.bf16.msra.mxu0 (!%p1759_p13), %v2285_v40 }
 0x1c5   : > { %2287 = vmatprep.subr.bf16.mxu0 (!%p1759_p13), %v2599_v11 }
 0x1c8   : > { %2289 = vmatpush3.bf16.msra.mxu0 (!%p1759_p13), %v2288_v46 }
 0x1c9   : > { %2290 = vmatprep.subr.bf16.mxu0 (!%p1759_p13), %v2599_v11 }
 0x1cc   : > { %2292 = vmatpush3.bf16.msra.mxu0 (!%p1759_p13), %v2291_v32 }
 0x1cd   : > { %2317 = vmatprep.subr.bf16.mxu0 (!%p1759_p13), %v2599_v11 }
 0x281   : > { %1331 = sbr.rel (%p1759_p13) target bundleno = 1304 (0x518), region = 164 }
 0x282   : > { %v1321_v4 = vpop.f32.mrb[4].mxu0 }
 0x283   : > { %v1322_v36 = vadd.f32 %v1758_v3, %v1321_v4  ;;  %v2011_v6 = vpop.f32.mrb[5].mxu0  ;;  %v1526_v3 = vld [vmem:[%s3130_s8 + $0x20] sm:$0xff] (!%p1759_p13)  ;;  %v1527_v4 = vld [vmem:[%s3130_s8 + $0x28] sm:$0xff] (!%p1759_p13) }
 0x284   : > { %v1529_v6 = vld [vmem:[%s3130_s8 + $0x38] sm:$0xff] (!%p1759_p13) }
 0x285   : > { %v1326_v7 = vadd.f32 %v1325_v5, %v1322_v36  ;;  %v2324_v5 = vpack.c.bf16 (!%p1759_p13), %v1527_v4, %v1526_v3  ;;  %v1528_v36 = vld [vmem:[%s3130_s8 + $0x30] sm:$0xff] (!%p1759_p13) }
 0x287   : > { %1327 = vst [vmem:[#allocation3] sm:$0xff] %v1326_v7  ;;  %v2327_v7 = vpack.c.bf16 (!%p1759_p13), %v1529_v6, %v1528_v36 }
 0x28e   : > { %v1332_v53 = vld [vmem:[#allocation3] sm:$0xff] }
 0x28f   : > { %v1333_v55 = vmul.f32 0.5, %v1332_v53 }
 0x291   : > { %2045 = vmatmul.mubr.f32.vlgmr.msra.gmra.mrb[0].mxu0 %v1333_v55 }
 0x292   : > { %2114 = vmatprep.mubr.msk.f32.mxu0 %vm2600_vm1, %v2601_v14  ;;  %2319 = vmatpush3.bf16.msra.mxu0 %v2318_v63  ;;  %v2333_v14 = vpack.c.bf16 %v1533_v13, %v1532_v12 }
 0x293   : > { %2320 = vmatprep.subr.bf16.mxu0 %v2599_v11 }
 0x296   : > { %2322 = vmatpush3.bf16.msra.mxu0 %v2321_v1 }
 0x297   : > { %2323 = vmatprep.subr.bf16.mxu0 %v2599_v11 }
 0x29a   : > { %2325 = vmatpush3.bf16.msra.mxu0 %v2324_v5 }
 0x29b   : > { %2326 = vmatprep.subr.bf16.mxu0 %v2599_v11 }
 0x29e   : > { %2328 = vmatpush3.bf16.msra.mxu0 %v2327_v7 }
 0x29f   : > { %2329 = vmatprep.subr.bf16.mxu0 %v2599_v11 }
 0x2a2   : > { %2331 = vmatpush3.bf16.msra.mxu0 %v2330_v10 }
 0x2a3   : > { %2332 = vmatprep.subr.bf16.mxu0 %v2599_v11 }
 0x2a6   : > { %2334 = vmatpush3.bf16.msra.mxu0 %v2333_v14 }
 0x2a7   : > { %2335 = vmatprep.subr.bf16.mxu0 %v2599_v11 }
 0x2aa   : > { %2337 = vmatpush3.bf16.msra.mxu0 %v2336_v17 }
 0x2ab   : > { %2338 = vmatprep.subr.bf16.mxu0 %v2599_v11  ;;  %v1761_v11 = vld [vmem:[%s3132_s17] ss:$0 sm:$0xff] }
 0x2ae   : > { %2340 = vmatpush3.bf16.msra.mxu0 %v2339_v24 }
 0x364   : > { %v1423_v19 = vpop.f32.mrb[0].mxu0 }
 0x365   : > { %v1424_v20 = vadd.f32 %v1760_v18, %v1423_v19  ;;  %v2046_v21 = vpop.f32.mrb[1].mxu0 }
 0x367   : > { %v1427_v22 = vmax.f32 %v1424_v20, 0.0 }
 0x369   : > { %2080 = vmatmul.mubr.f32.vlgmr.msra.gmra.mrb[0].mxu1 %v1427_v22 }
 0x43c   : > { %v1517_v25 = vpop.f32.mrb[0].mxu1 }
 0x43d   : > { %v1518_v26 = vadd.f32 %v1761_v11, %v1517_v25  ;;  %v2081_v27 = vpop.f32.mrb[1].mxu1 }
 0x43f   : > { %v1521_v28 = vmax.f32 %v1518_v26, 0.0 }
 0x441   : > { %2115 = vmatmul.mubr.f32.vlgmr.msra.gmra.mrb[2].mxu0 %v1521_v28 }
 0x514   : > { %v1611_v30 = vpop.f32.mrb[2].mxu0 }
 0x515   : > { %v1612_v31 = vadd.f32 %v1762_v29, %v1611_v30  ;;  %v2116_v33 = vpop.f32.mrb[3].mxu0 }
 0x517   : > { %1615 = vst [vmem:[#allocation12] sm:$0xff] %v1612_v31 }
 0x518 PF: > { %s3134_s21 = sadd.s32 4294967295, %s2588_s25   ;;  %s2602_s14 = smov [#allocation12]  }
 0x519   : > { %p3050_p0 = scmp.eq.s32.totalorder %s3134_s21, 1  ;;  %s1625_s7 = sshll.u32 %s2602_s14, 4  ;;  %s1626_s7 = int_to_ptr.vmem [resolvable:$true] %s1625_s7 }
 0x51a   : > { %s2512_s23 = scalar_lea.vmem %s1626_s7, 128  ;;  %p2519_p5 = scmp.lt.s32.totalorder %s1626_s7, %s1626_s7 }
 0x51b   : > { %p2513_p1 = scmp.ne.s32.totalorder %s1626_s7, %s2512_s23  ;;  %p2520_p6 = scmp.lt.s32.totalorder %s2512_s23, %s2512_s23 }
 0x51d   : > { %p2514_p2 = pnand %p2513_p1, %p3050_p0  ;;  %p2521_p9 = por %p2520_p6, %p2519_p5 }
 0x51f   : > { %p2515_p4 = pneg %p2514_p2 }
 0x521   : > { %p2522_p3 = pnand %p2521_p9, %p2515_p4 }
 0x523   : > { %2525 = shalt.err (!%p2522_p3)
}
 0x524   : > { %s3136_s20 = sld [smem:[#allocation23_spill]] }
 0x52a   : > { %s2526_s30 = scalar_lea.hbm %s3136_s20, 128 }
 0x52b   : > { %p2527_p12 = scmp.ne.s32.totalorder %s3136_s20, %s2526_s30  ;;  %p2532_p8 = scmp.lt.u32.totalorder %s2526_s30, %s3136_s20 }
 0x52d   : > { %p2528_p10 = pnand %p2527_p12, %p3050_p0 }
 0x52f   : > { %p2529_p7 = pneg %p2528_p10 }
 0x531   : > { %p2534_p11 = pnand %p2532_p8, %p2529_p7 }
 0x533   : > { %2537 = shalt.err (!%p2534_p11)
}
 0x534   : > { %2354 = dma.vmem_to_hbm [thread:$0]  (%p3050_p0), %s1626_s7, 128, %s3136_s20, [#allocation8]  }
 0x535   : > { %2567 = dma.done.wait (%p3050_p0), [#allocation8], 128  }
 0x536   : > { %2569 = vsyncadd (%p3050_p0), [#allocation8], 4294967168 }
 0x537 PF: > { %s25_s25 = sadd.s32 1, %s2588_s25   ;;  %s3137_s17 = sld [smem:[#allocation17_spill]] }
 0x538   : > { %p22_p13 = scmp.ge.s32.totalorder %s25_s25, 4   ;;  %s3138_s29 = sld [smem:[#allocation16_spill]] }
 0x539   : > { %s3139_s21 = smov %s2576_s22  ;;  %s3141_s23 = smov %s2584_s24 }
 0x53a   :  { %24 = sbr.rel (!%p22_p13) target bundleno = 12 (0xc), region = 208 }
 0x53d   : > { %s3140_s22 = smov %s3137_s17 }
 0x53e   : > { %s3142_s24 = smov %s3138_s29 }
 0x541   :  { %1638 = vsyncpa [#allocation7], 1 }
 0x542   :  { %1640 = vsyncpa [#allocation7 + $0x1], 1 }
 0x543   :  { %1641 = vsyncpa [#allocation10], 1 }
 0x544   :  { %1642 = vsyncpa [#allocation8], 1 }
 0x545   :  { %1644 = vsyncpa [#allocation8 + $0x1], 1 }

</bundles_post_ra>
